<compile_context>
chip_gen: v7x
topology: tpu7x:2x2x1
jax: 0.10.0
libtpu: 0.0.40
codegen_flags: <defaults>
</compile_context>

<pallas_src>
import jax
import jax.numpy as jnp
from jax import lax
from jax.experimental import pallas as pl
from jax.experimental.pallas import tpu as pltpu


def _decoder_kernel(w_ref, x_ref, out_ref):
    # w_ref  : (L, 16) f32 SMEM  raw PyTorch LSTM(1,1) params per layer:
    #          [w_ii,w_if,w_ig,w_io, w_hi,w_hf,w_hg,w_ho,
    #           b_ii,b_if,b_ig,b_io, b_hi,b_hf,b_hg,b_ho]
    # x_ref  : (S, B)  f32 VMEM  input sequence, batch on the lane axis
    # out_ref: (S, B)  f32 VMEM  hidden states of the deepest layer
    S, B = x_ref.shape
    L = w_ref.shape[0]

    x = x_ref[...]                       # single load; stays in vregs

    # Hoisted scalar->vector splats (once, off the recurrence path).
    def splat(s):
        return jnp.full((1, B), s, dtype=jnp.float32)

    wi = [[splat(w_ref[l, g]) for g in range(4)] for l in range(L)]          # i,f,g,o
    wh = [[splat(w_ref[l, 4 + g]) for g in range(4)] for l in range(L)]
    bb = [[splat(w_ref[l, 8 + g] + w_ref[l, 12 + g]) for g in range(4)]      # fold b_ih+b_hh
          for l in range(L)]

    # Wavefront recurrence: at step w, layer l processes timestep t = w - l.
    # Layer l consumes layer (l-1)'s hidden from the previous wavefront step,
    # which is exactly its output at the same timestep t.
    h = [None] * L                       # None == zero initial state (peeled)
    c = [None] * L
    for w in range(S + L - 1):           # fully unrolled (S + L - 1 = 10 steps)
        nh = list(h)
        nc = list(c)
        for l in range(L):
            t = w - l
            if not (0 <= t < S):
                continue                 # boundary: inactive layer does no work
            xin = x[t:t + 1] if l == 0 else h[l - 1]          # (1, B)
            if h[l] is None:
                # First timestep of this layer: h = c = 0, so drop the
                # recurrent terms and the forget gate entirely.
                i = jax.nn.sigmoid(wi[l][0] * xin + bb[l][0])
                g = jnp.tanh(wi[l][2] * xin + bb[l][2])
                o = jax.nn.sigmoid(wi[l][3] * xin + bb[l][3])
                cn = i * g
            else:
                i = jax.nn.sigmoid(wi[l][0] * xin + wh[l][0] * h[l] + bb[l][0])
                f = jax.nn.sigmoid(wi[l][1] * xin + wh[l][1] * h[l] + bb[l][1])
                g = jnp.tanh(wi[l][2] * xin + wh[l][2] * h[l] + bb[l][2])
                o = jax.nn.sigmoid(wi[l][3] * xin + wh[l][3] * h[l] + bb[l][3])
                cn = f * c[l] + i * g
            hn = o * jnp.tanh(cn)
            nh[l] = hn
            nc[l] = cn
            if l == L - 1:
                out_ref[pl.ds(t, 1), :] = hn       # direct per-row store
        h, c = nh, nc


def _decoder_forward_impl(x, weights):
    """x: (seq, batch, 1) f32; weights: (L, 16) f32 PyTorch-layout LSTM(1,1) params.

    Returns (seq, batch, 1) f32 — output sequence of the deepest LSTM layer.
    """
    S, B, F = x.shape
    assert F == 1
    x2 = x[..., 0].astype(jnp.float32)               # (S, B), metadata-only squeeze

    out = pl.pallas_call(
        _decoder_kernel,
        out_shape=jax.ShapeDtypeStruct((S, B), jnp.float32),
        in_specs=[
            pl.BlockSpec(memory_space=pltpu.MemorySpace.SMEM),   # weights (L, 16)
            pl.BlockSpec(memory_space=pltpu.MemorySpace.VMEM),   # x (S, B)
        ],
        out_specs=pl.BlockSpec(memory_space=pltpu.MemorySpace.VMEM),
    )(weights.astype(jnp.float32), x2)
    return out[..., None]


decoder_forward = jax.jit(_decoder_forward_impl)


# ---------------- pure-JAX reference (for verification) ----------------
def _lstm_layer_ref(x, w):
    # x: (S, B), w: (16,)
    def step(carry, xt):
        h, c = carry
        i = jax.nn.sigmoid(w[0] * xt + w[4] * h + w[8] + w[12])
        f = jax.nn.sigmoid(w[1] * xt + w[5] * h + w[9] + w[13])
        g = jnp.tanh(w[2] * xt + w[6] * h + w[10] + w[14])
        o = jax.nn.sigmoid(w[3] * xt + w[7] * h + w[11] + w[15])
        c_new = f * c + i * g
        h_new = o * jnp.tanh(c_new)
        return (h_new, c_new), h_new

    B = x.shape[1]
    init = (jnp.zeros((B,), jnp.float32), jnp.zeros((B,), jnp.float32))
    _, ys = lax.scan(step, init, x)
    return ys


def decoder_ref(x, weights):
    h = x[..., 0]
    for layer in range(weights.shape[0]):
        h = _lstm_layer_ref(h, weights[layer])
    return h[..., None]


if __name__ == "__main__":
    key = jax.random.PRNGKey(0)
    k_x, k_w = jax.random.split(key)

    SEQ, BATCH = 8, 2
    x = jax.random.normal(k_x, (SEQ, BATCH, 1), dtype=jnp.float32)

    # nn.LSTM(1,1) default init: U(-1/sqrt(hidden), 1/sqrt(hidden)) = U(-1, 1).
    # 3 layers x (4 w_ih + 4 w_hh + 4 b_ih + 4 b_hh) = (3, 16) scalar params.
    weights = jax.random.uniform(k_w, (3, 16), dtype=jnp.float32, minval=-1.0, maxval=1.0)

    out = jax.block_until_ready(decoder_forward(x, weights))
    ref = decoder_ref(x, weights)

    assert out.shape == (SEQ, BATCH, 1)
    assert jnp.allclose(out, ref, atol=1e-5, rtol=1e-5), "mismatch vs reference"

    print("KERNEL_OK")
</pallas_src>

<mosaic_0001>
module attributes {stable_mosaic.version = 11 : i64} {
  func.func @_decoder_kernel(%arg0: memref<3x16xf32, #tpu.memory_space<smem>>, %arg1: memref<8x2xf32, #tpu.memory_space<vmem>>, %arg2: memref<8x2xf32, #tpu.memory_space<vmem>>) attributes {dimension_semantics = [], scalar_prefetch = 0 : i64, scratch_operands = 0 : i64, tpu.core_type = #tpu.core_type<tc>} {
    %c0 = arith.constant 0 : index
    %c0_0 = arith.constant 0 : index
    %0 = vector.load %arg1[%c0, %c0_0] : memref<8x2xf32, #tpu.memory_space<vmem>>, vector<8x2xf32>
    %c0_1 = arith.constant 0 : index
    %c0_2 = arith.constant 0 : index
    %1 = memref.load %arg0[%c0_1, %c0_2] : memref<3x16xf32, #tpu.memory_space<smem>>
    %2 = vector.broadcast %1 : f32 to vector<1x2xf32>
    %c0_3 = arith.constant 0 : index
    %c1 = arith.constant 1 : index
    %3 = memref.load %arg0[%c0_3, %c1] : memref<3x16xf32, #tpu.memory_space<smem>>
    %4 = vector.broadcast %3 : f32 to vector<1x2xf32>
    %c0_4 = arith.constant 0 : index
    %c2 = arith.constant 2 : index
    %5 = memref.load %arg0[%c0_4, %c2] : memref<3x16xf32, #tpu.memory_space<smem>>
    %6 = vector.broadcast %5 : f32 to vector<1x2xf32>
    %c0_5 = arith.constant 0 : index
    %c3 = arith.constant 3 : index
    %7 = memref.load %arg0[%c0_5, %c3] : memref<3x16xf32, #tpu.memory_space<smem>>
    %8 = vector.broadcast %7 : f32 to vector<1x2xf32>
    %c1_6 = arith.constant 1 : index
    %c0_7 = arith.constant 0 : index
    %9 = memref.load %arg0[%c1_6, %c0_7] : memref<3x16xf32, #tpu.memory_space<smem>>
    %10 = vector.broadcast %9 : f32 to vector<1x2xf32>
    %c1_8 = arith.constant 1 : index
    %c1_9 = arith.constant 1 : index
    %11 = memref.load %arg0[%c1_8, %c1_9] : memref<3x16xf32, #tpu.memory_space<smem>>
    %12 = vector.broadcast %11 : f32 to vector<1x2xf32>
    %c1_10 = arith.constant 1 : index
    %c2_11 = arith.constant 2 : index
    %13 = memref.load %arg0[%c1_10, %c2_11] : memref<3x16xf32, #tpu.memory_space<smem>>
    %14 = vector.broadcast %13 : f32 to vector<1x2xf32>
    %c1_12 = arith.constant 1 : index
    %c3_13 = arith.constant 3 : index
    %15 = memref.load %arg0[%c1_12, %c3_13] : memref<3x16xf32, #tpu.memory_space<smem>>
    %16 = vector.broadcast %15 : f32 to vector<1x2xf32>
    %c2_14 = arith.constant 2 : index
    %c0_15 = arith.constant 0 : index
    %17 = memref.load %arg0[%c2_14, %c0_15] : memref<3x16xf32, #tpu.memory_space<smem>>
    %18 = vector.broadcast %17 : f32 to vector<1x2xf32>
    %c2_16 = arith.constant 2 : index
    %c1_17 = arith.constant 1 : index
    %19 = memref.load %arg0[%c2_16, %c1_17] : memref<3x16xf32, #tpu.memory_space<smem>>
    %20 = vector.broadcast %19 : f32 to vector<1x2xf32>
    %c2_18 = arith.constant 2 : index
    %c2_19 = arith.constant 2 : index
    %21 = memref.load %arg0[%c2_18, %c2_19] : memref<3x16xf32, #tpu.memory_space<smem>>
    %22 = vector.broadcast %21 : f32 to vector<1x2xf32>
    %c2_20 = arith.constant 2 : index
    %c3_21 = arith.constant 3 : index
    %23 = memref.load %arg0[%c2_20, %c3_21] : memref<3x16xf32, #tpu.memory_space<smem>>
    %24 = vector.broadcast %23 : f32 to vector<1x2xf32>
    %c0_22 = arith.constant 0 : index
    %c4 = arith.constant 4 : index
    %25 = memref.load %arg0[%c0_22, %c4] : memref<3x16xf32, #tpu.memory_space<smem>>
    %26 = vector.broadcast %25 : f32 to vector<1x2xf32>
    %c0_23 = arith.constant 0 : index
    %c5 = arith.constant 5 : index
    %27 = memref.load %arg0[%c0_23, %c5] : memref<3x16xf32, #tpu.memory_space<smem>>
    %28 = vector.broadcast %27 : f32 to vector<1x2xf32>
    %c0_24 = arith.constant 0 : index
    %c6 = arith.constant 6 : index
    %29 = memref.load %arg0[%c0_24, %c6] : memref<3x16xf32, #tpu.memory_space<smem>>
    %30 = vector.broadcast %29 : f32 to vector<1x2xf32>
    %c0_25 = arith.constant 0 : index
    %c7 = arith.constant 7 : index
    %31 = memref.load %arg0[%c0_25, %c7] : memref<3x16xf32, #tpu.memory_space<smem>>
    %32 = vector.broadcast %31 : f32 to vector<1x2xf32>
    %c1_26 = arith.constant 1 : index
    %c4_27 = arith.constant 4 : index
    %33 = memref.load %arg0[%c1_26, %c4_27] : memref<3x16xf32, #tpu.memory_space<smem>>
    %34 = vector.broadcast %33 : f32 to vector<1x2xf32>
    %c1_28 = arith.constant 1 : index
    %c5_29 = arith.constant 5 : index
    %35 = memref.load %arg0[%c1_28, %c5_29] : memref<3x16xf32, #tpu.memory_space<smem>>
    %36 = vector.broadcast %35 : f32 to vector<1x2xf32>
    %c1_30 = arith.constant 1 : index
    %c6_31 = arith.constant 6 : index
    %37 = memref.load %arg0[%c1_30, %c6_31] : memref<3x16xf32, #tpu.memory_space<smem>>
    %38 = vector.broadcast %37 : f32 to vector<1x2xf32>
    %c1_32 = arith.constant 1 : index
    %c7_33 = arith.constant 7 : index
    %39 = memref.load %arg0[%c1_32, %c7_33] : memref<3x16xf32, #tpu.memory_space<smem>>
    %40 = vector.broadcast %39 : f32 to vector<1x2xf32>
    %c2_34 = arith.constant 2 : index
    %c4_35 = arith.constant 4 : index
    %41 = memref.load %arg0[%c2_34, %c4_35] : memref<3x16xf32, #tpu.memory_space<smem>>
    %42 = vector.broadcast %41 : f32 to vector<1x2xf32>
    %c2_36 = arith.constant 2 : index
    %c5_37 = arith.constant 5 : index
    %43 = memref.load %arg0[%c2_36, %c5_37] : memref<3x16xf32, #tpu.memory_space<smem>>
    %44 = vector.broadcast %43 : f32 to vector<1x2xf32>
    %c2_38 = arith.constant 2 : index
    %c6_39 = arith.constant 6 : index
    %45 = memref.load %arg0[%c2_38, %c6_39] : memref<3x16xf32, #tpu.memory_space<smem>>
    %46 = vector.broadcast %45 : f32 to vector<1x2xf32>
    %c2_40 = arith.constant 2 : index
    %c7_41 = arith.constant 7 : index
    %47 = memref.load %arg0[%c2_40, %c7_41] : memref<3x16xf32, #tpu.memory_space<smem>>
    %48 = vector.broadcast %47 : f32 to vector<1x2xf32>
    %c0_42 = arith.constant 0 : index
    %c8 = arith.constant 8 : index
    %49 = memref.load %arg0[%c0_42, %c8] : memref<3x16xf32, #tpu.memory_space<smem>>
    %c0_43 = arith.constant 0 : index
    %c12 = arith.constant 12 : index
    %50 = memref.load %arg0[%c0_43, %c12] : memref<3x16xf32, #tpu.memory_space<smem>>
    %51 = arith.addf %49, %50 : f32
    %52 = vector.broadcast %51 : f32 to vector<1x2xf32>
    %c0_44 = arith.constant 0 : index
    %c9 = arith.constant 9 : index
    %53 = memref.load %arg0[%c0_44, %c9] : memref<3x16xf32, #tpu.memory_space<smem>>
    %c0_45 = arith.constant 0 : index
    %c13 = arith.constant 13 : index
    %54 = memref.load %arg0[%c0_45, %c13] : memref<3x16xf32, #tpu.memory_space<smem>>
    %55 = arith.addf %53, %54 : f32
    %56 = vector.broadcast %55 : f32 to vector<1x2xf32>
    %c0_46 = arith.constant 0 : index
    %c10 = arith.constant 10 : index
    %57 = memref.load %arg0[%c0_46, %c10] : memref<3x16xf32, #tpu.memory_space<smem>>
    %c0_47 = arith.constant 0 : index
    %c14 = arith.constant 14 : index
    %58 = memref.load %arg0[%c0_47, %c14] : memref<3x16xf32, #tpu.memory_space<smem>>
    %59 = arith.addf %57, %58 : f32
    %60 = vector.broadcast %59 : f32 to vector<1x2xf32>
    %c0_48 = arith.constant 0 : index
    %c11 = arith.constant 11 : index
    %61 = memref.load %arg0[%c0_48, %c11] : memref<3x16xf32, #tpu.memory_space<smem>>
    %c0_49 = arith.constant 0 : index
    %c15 = arith.constant 15 : index
    %62 = memref.load %arg0[%c0_49, %c15] : memref<3x16xf32, #tpu.memory_space<smem>>
    %63 = arith.addf %61, %62 : f32
    %64 = vector.broadcast %63 : f32 to vector<1x2xf32>
    %c1_50 = arith.constant 1 : index
    %c8_51 = arith.constant 8 : index
    %65 = memref.load %arg0[%c1_50, %c8_51] : memref<3x16xf32, #tpu.memory_space<smem>>
    %c1_52 = arith.constant 1 : index
    %c12_53 = arith.constant 12 : index
    %66 = memref.load %arg0[%c1_52, %c12_53] : memref<3x16xf32, #tpu.memory_space<smem>>
    %67 = arith.addf %65, %66 : f32
    %68 = vector.broadcast %67 : f32 to vector<1x2xf32>
    %c1_54 = arith.constant 1 : index
    %c9_55 = arith.constant 9 : index
    %69 = memref.load %arg0[%c1_54, %c9_55] : memref<3x16xf32, #tpu.memory_space<smem>>
    %c1_56 = arith.constant 1 : index
    %c13_57 = arith.constant 13 : index
    %70 = memref.load %arg0[%c1_56, %c13_57] : memref<3x16xf32, #tpu.memory_space<smem>>
    %71 = arith.addf %69, %70 : f32
    %72 = vector.broadcast %71 : f32 to vector<1x2xf32>
    %c1_58 = arith.constant 1 : index
    %c10_59 = arith.constant 10 : index
    %73 = memref.load %arg0[%c1_58, %c10_59] : memref<3x16xf32, #tpu.memory_space<smem>>
    %c1_60 = arith.constant 1 : index
    %c14_61 = arith.constant 14 : index
    %74 = memref.load %arg0[%c1_60, %c14_61] : memref<3x16xf32, #tpu.memory_space<smem>>
    %75 = arith.addf %73, %74 : f32
    %76 = vector.broadcast %75 : f32 to vector<1x2xf32>
    %c1_62 = arith.constant 1 : index
    %c11_63 = arith.constant 11 : index
    %77 = memref.load %arg0[%c1_62, %c11_63] : memref<3x16xf32, #tpu.memory_space<smem>>
    %c1_64 = arith.constant 1 : index
    %c15_65 = arith.constant 15 : index
    %78 = memref.load %arg0[%c1_64, %c15_65] : memref<3x16xf32, #tpu.memory_space<smem>>
    %79 = arith.addf %77, %78 : f32
    %80 = vector.broadcast %79 : f32 to vector<1x2xf32>
    %c2_66 = arith.constant 2 : index
    %c8_67 = arith.constant 8 : index
    %81 = memref.load %arg0[%c2_66, %c8_67] : memref<3x16xf32, #tpu.memory_space<smem>>
    %c2_68 = arith.constant 2 : index
    %c12_69 = arith.constant 12 : index
    %82 = memref.load %arg0[%c2_68, %c12_69] : memref<3x16xf32, #tpu.memory_space<smem>>
    %83 = arith.addf %81, %82 : f32
    %84 = vector.broadcast %83 : f32 to vector<1x2xf32>
    %c2_70 = arith.constant 2 : index
    %c9_71 = arith.constant 9 : index
    %85 = memref.load %arg0[%c2_70, %c9_71] : memref<3x16xf32, #tpu.memory_space<smem>>
    %c2_72 = arith.constant 2 : index
    %c13_73 = arith.constant 13 : index
    %86 = memref.load %arg0[%c2_72, %c13_73] : memref<3x16xf32, #tpu.memory_space<smem>>
    %87 = arith.addf %85, %86 : f32
    %88 = vector.broadcast %87 : f32 to vector<1x2xf32>
    %c2_74 = arith.constant 2 : index
    %c10_75 = arith.constant 10 : index
    %89 = memref.load %arg0[%c2_74, %c10_75] : memref<3x16xf32, #tpu.memory_space<smem>>
    %c2_76 = arith.constant 2 : index
    %c14_77 = arith.constant 14 : index
    %90 = memref.load %arg0[%c2_76, %c14_77] : memref<3x16xf32, #tpu.memory_space<smem>>
    %91 = arith.addf %89, %90 : f32
    %92 = vector.broadcast %91 : f32 to vector<1x2xf32>
    %c2_78 = arith.constant 2 : index
    %c11_79 = arith.constant 11 : index
    %93 = memref.load %arg0[%c2_78, %c11_79] : memref<3x16xf32, #tpu.memory_space<smem>>
    %c2_80 = arith.constant 2 : index
    %c15_81 = arith.constant 15 : index
    %94 = memref.load %arg0[%c2_80, %c15_81] : memref<3x16xf32, #tpu.memory_space<smem>>
    %95 = arith.addf %93, %94 : f32
    %96 = vector.broadcast %95 : f32 to vector<1x2xf32>
    %97 = vector.extract_strided_slice %0 {offsets = [0, 0], sizes = [1, 2], strides = [1, 1]} : vector<8x2xf32> to vector<1x2xf32>
    %98 = arith.mulf %2, %97 : vector<1x2xf32>
    %99 = arith.addf %98, %52 : vector<1x2xf32>
    %100 = arith.negf %99 : vector<1x2xf32>
    %101 = math.exp %100 : vector<1x2xf32>
    %cst = arith.constant 1.000000e+00 : f32
    %102 = vector.broadcast %cst : f32 to vector<1x2xf32>
    %103 = arith.addf %102, %101 : vector<1x2xf32>
    %104 = arith.divf %102, %103 : vector<1x2xf32>
    %105 = arith.mulf %6, %97 : vector<1x2xf32>
    %106 = arith.addf %105, %60 : vector<1x2xf32>
    %107 = math.tanh %106 : vector<1x2xf32>
    %108 = arith.mulf %8, %97 : vector<1x2xf32>
    %109 = arith.addf %108, %64 : vector<1x2xf32>
    %110 = arith.negf %109 : vector<1x2xf32>
    %111 = math.exp %110 : vector<1x2xf32>
    %cst_82 = arith.constant 1.000000e+00 : f32
    %112 = vector.broadcast %cst_82 : f32 to vector<1x2xf32>
    %113 = arith.addf %112, %111 : vector<1x2xf32>
    %114 = arith.divf %112, %113 : vector<1x2xf32>
    %115 = arith.mulf %104, %107 : vector<1x2xf32>
    %116 = math.tanh %115 : vector<1x2xf32>
    %117 = arith.mulf %114, %116 : vector<1x2xf32>
    %118 = vector.extract_strided_slice %0 {offsets = [1, 0], sizes = [1, 2], strides = [1, 1]} : vector<8x2xf32> to vector<1x2xf32>
    %119 = arith.mulf %2, %118 : vector<1x2xf32>
    %120 = arith.mulf %26, %117 : vector<1x2xf32>
    %121 = arith.addf %119, %120 : vector<1x2xf32>
    %122 = arith.addf %121, %52 : vector<1x2xf32>
    %123 = arith.negf %122 : vector<1x2xf32>
    %124 = math.exp %123 : vector<1x2xf32>
    %cst_83 = arith.constant 1.000000e+00 : f32
    %125 = vector.broadcast %cst_83 : f32 to vector<1x2xf32>
    %126 = arith.addf %125, %124 : vector<1x2xf32>
    %127 = arith.divf %125, %126 : vector<1x2xf32>
    %128 = arith.mulf %4, %118 : vector<1x2xf32>
    %129 = arith.mulf %28, %117 : vector<1x2xf32>
    %130 = arith.addf %128, %129 : vector<1x2xf32>
    %131 = arith.addf %130, %56 : vector<1x2xf32>
    %132 = arith.negf %131 : vector<1x2xf32>
    %133 = math.exp %132 : vector<1x2xf32>
    %cst_84 = arith.constant 1.000000e+00 : f32
    %134 = vector.broadcast %cst_84 : f32 to vector<1x2xf32>
    %135 = arith.addf %134, %133 : vector<1x2xf32>
    %136 = arith.divf %134, %135 : vector<1x2xf32>
    %137 = arith.mulf %6, %118 : vector<1x2xf32>
    %138 = arith.mulf %30, %117 : vector<1x2xf32>
    %139 = arith.addf %137, %138 : vector<1x2xf32>
    %140 = arith.addf %139, %60 : vector<1x2xf32>
    %141 = math.tanh %140 : vector<1x2xf32>
    %142 = arith.mulf %8, %118 : vector<1x2xf32>
    %143 = arith.mulf %32, %117 : vector<1x2xf32>
    %144 = arith.addf %142, %143 : vector<1x2xf32>
    %145 = arith.addf %144, %64 : vector<1x2xf32>
    %146 = arith.negf %145 : vector<1x2xf32>
    %147 = math.exp %146 : vector<1x2xf32>
    %cst_85 = arith.constant 1.000000e+00 : f32
    %148 = vector.broadcast %cst_85 : f32 to vector<1x2xf32>
    %149 = arith.addf %148, %147 : vector<1x2xf32>
    %150 = arith.divf %148, %149 : vector<1x2xf32>
    %151 = arith.mulf %136, %115 : vector<1x2xf32>
    %152 = arith.mulf %127, %141 : vector<1x2xf32>
    %153 = arith.addf %151, %152 : vector<1x2xf32>
    %154 = math.tanh %153 : vector<1x2xf32>
    %155 = arith.mulf %150, %154 : vector<1x2xf32>
    %156 = arith.mulf %10, %117 : vector<1x2xf32>
    %157 = arith.addf %156, %68 : vector<1x2xf32>
    %158 = arith.negf %157 : vector<1x2xf32>
    %159 = math.exp %158 : vector<1x2xf32>
    %cst_86 = arith.constant 1.000000e+00 : f32
    %160 = vector.broadcast %cst_86 : f32 to vector<1x2xf32>
    %161 = arith.addf %160, %159 : vector<1x2xf32>
    %162 = arith.divf %160, %161 : vector<1x2xf32>
    %163 = arith.mulf %14, %117 : vector<1x2xf32>
    %164 = arith.addf %163, %76 : vector<1x2xf32>
    %165 = math.tanh %164 : vector<1x2xf32>
    %166 = arith.mulf %16, %117 : vector<1x2xf32>
    %167 = arith.addf %166, %80 : vector<1x2xf32>
    %168 = arith.negf %167 : vector<1x2xf32>
    %169 = math.exp %168 : vector<1x2xf32>
    %cst_87 = arith.constant 1.000000e+00 : f32
    %170 = vector.broadcast %cst_87 : f32 to vector<1x2xf32>
    %171 = arith.addf %170, %169 : vector<1x2xf32>
    %172 = arith.divf %170, %171 : vector<1x2xf32>
    %173 = arith.mulf %162, %165 : vector<1x2xf32>
    %174 = math.tanh %173 : vector<1x2xf32>
    %175 = arith.mulf %172, %174 : vector<1x2xf32>
    %176 = vector.extract_strided_slice %0 {offsets = [2, 0], sizes = [1, 2], strides = [1, 1]} : vector<8x2xf32> to vector<1x2xf32>
    %177 = arith.mulf %2, %176 : vector<1x2xf32>
    %178 = arith.mulf %26, %155 : vector<1x2xf32>
    %179 = arith.addf %177, %178 : vector<1x2xf32>
    %180 = arith.addf %179, %52 : vector<1x2xf32>
    %181 = arith.negf %180 : vector<1x2xf32>
    %182 = math.exp %181 : vector<1x2xf32>
    %cst_88 = arith.constant 1.000000e+00 : f32
    %183 = vector.broadcast %cst_88 : f32 to vector<1x2xf32>
    %184 = arith.addf %183, %182 : vector<1x2xf32>
    %185 = arith.divf %183, %184 : vector<1x2xf32>
    %186 = arith.mulf %4, %176 : vector<1x2xf32>
    %187 = arith.mulf %28, %155 : vector<1x2xf32>
    %188 = arith.addf %186, %187 : vector<1x2xf32>
    %189 = arith.addf %188, %56 : vector<1x2xf32>
    %190 = arith.negf %189 : vector<1x2xf32>
    %191 = math.exp %190 : vector<1x2xf32>
    %cst_89 = arith.constant 1.000000e+00 : f32
    %192 = vector.broadcast %cst_89 : f32 to vector<1x2xf32>
    %193 = arith.addf %192, %191 : vector<1x2xf32>
    %194 = arith.divf %192, %193 : vector<1x2xf32>
    %195 = arith.mulf %6, %176 : vector<1x2xf32>
    %196 = arith.mulf %30, %155 : vector<1x2xf32>
    %197 = arith.addf %195, %196 : vector<1x2xf32>
    %198 = arith.addf %197, %60 : vector<1x2xf32>
    %199 = math.tanh %198 : vector<1x2xf32>
    %200 = arith.mulf %8, %176 : vector<1x2xf32>
    %201 = arith.mulf %32, %155 : vector<1x2xf32>
    %202 = arith.addf %200, %201 : vector<1x2xf32>
    %203 = arith.addf %202, %64 : vector<1x2xf32>
    %204 = arith.negf %203 : vector<1x2xf32>
    %205 = math.exp %204 : vector<1x2xf32>
    %cst_90 = arith.constant 1.000000e+00 : f32
    %206 = vector.broadcast %cst_90 : f32 to vector<1x2xf32>
    %207 = arith.addf %206, %205 : vector<1x2xf32>
    %208 = arith.divf %206, %207 : vector<1x2xf32>
    %209 = arith.mulf %194, %153 : vector<1x2xf32>
    %210 = arith.mulf %185, %199 : vector<1x2xf32>
    %211 = arith.addf %209, %210 : vector<1x2xf32>
    %212 = math.tanh %211 : vector<1x2xf32>
    %213 = arith.mulf %208, %212 : vector<1x2xf32>
    %214 = arith.mulf %10, %155 : vector<1x2xf32>
    %215 = arith.mulf %34, %175 : vector<1x2xf32>
    %216 = arith.addf %214, %215 : vector<1x2xf32>
    %217 = arith.addf %216, %68 : vector<1x2xf32>
    %218 = arith.negf %217 : vector<1x2xf32>
    %219 = math.exp %218 : vector<1x2xf32>
    %cst_91 = arith.constant 1.000000e+00 : f32
    %220 = vector.broadcast %cst_91 : f32 to vector<1x2xf32>
    %221 = arith.addf %220, %219 : vector<1x2xf32>
    %222 = arith.divf %220, %221 : vector<1x2xf32>
    %223 = arith.mulf %12, %155 : vector<1x2xf32>
    %224 = arith.mulf %36, %175 : vector<1x2xf32>
    %225 = arith.addf %223, %224 : vector<1x2xf32>
    %226 = arith.addf %225, %72 : vector<1x2xf32>
    %227 = arith.negf %226 : vector<1x2xf32>
    %228 = math.exp %227 : vector<1x2xf32>
    %cst_92 = arith.constant 1.000000e+00 : f32
    %229 = vector.broadcast %cst_92 : f32 to vector<1x2xf32>
    %230 = arith.addf %229, %228 : vector<1x2xf32>
    %231 = arith.divf %229, %230 : vector<1x2xf32>
    %232 = arith.mulf %14, %155 : vector<1x2xf32>
    %233 = arith.mulf %38, %175 : vector<1x2xf32>
    %234 = arith.addf %232, %233 : vector<1x2xf32>
    %235 = arith.addf %234, %76 : vector<1x2xf32>
    %236 = math.tanh %235 : vector<1x2xf32>
    %237 = arith.mulf %16, %155 : vector<1x2xf32>
    %238 = arith.mulf %40, %175 : vector<1x2xf32>
    %239 = arith.addf %237, %238 : vector<1x2xf32>
    %240 = arith.addf %239, %80 : vector<1x2xf32>
    %241 = arith.negf %240 : vector<1x2xf32>
    %242 = math.exp %241 : vector<1x2xf32>
    %cst_93 = arith.constant 1.000000e+00 : f32
    %243 = vector.broadcast %cst_93 : f32 to vector<1x2xf32>
    %244 = arith.addf %243, %242 : vector<1x2xf32>
    %245 = arith.divf %243, %244 : vector<1x2xf32>
    %246 = arith.mulf %231, %173 : vector<1x2xf32>
    %247 = arith.mulf %222, %236 : vector<1x2xf32>
    %248 = arith.addf %246, %247 : vector<1x2xf32>
    %249 = math.tanh %248 : vector<1x2xf32>
    %250 = arith.mulf %245, %249 : vector<1x2xf32>
    %251 = arith.mulf %18, %175 : vector<1x2xf32>
    %252 = arith.addf %251, %84 : vector<1x2xf32>
    %253 = arith.negf %252 : vector<1x2xf32>
    %254 = math.exp %253 : vector<1x2xf32>
    %cst_94 = arith.constant 1.000000e+00 : f32
    %255 = vector.broadcast %cst_94 : f32 to vector<1x2xf32>
    %256 = arith.addf %255, %254 : vector<1x2xf32>
    %257 = arith.divf %255, %256 : vector<1x2xf32>
    %258 = arith.mulf %22, %175 : vector<1x2xf32>
    %259 = arith.addf %258, %92 : vector<1x2xf32>
    %260 = math.tanh %259 : vector<1x2xf32>
    %261 = arith.mulf %24, %175 : vector<1x2xf32>
    %262 = arith.addf %261, %96 : vector<1x2xf32>
    %263 = arith.negf %262 : vector<1x2xf32>
    %264 = math.exp %263 : vector<1x2xf32>
    %cst_95 = arith.constant 1.000000e+00 : f32
    %265 = vector.broadcast %cst_95 : f32 to vector<1x2xf32>
    %266 = arith.addf %265, %264 : vector<1x2xf32>
    %267 = arith.divf %265, %266 : vector<1x2xf32>
    %268 = arith.mulf %257, %260 : vector<1x2xf32>
    %269 = math.tanh %268 : vector<1x2xf32>
    %270 = arith.mulf %267, %269 : vector<1x2xf32>
    %c0_96 = arith.constant 0 : index
    %c0_97 = arith.constant 0 : index
    %271 = vector.load %arg2[%c0_96, %c0_97] : memref<8x2xf32, #tpu.memory_space<vmem>>, vector<1x2xf32>
    tpu.vector_store %arg2[%c0_96, %c0_97], %270 {strides = array<i32>} : memref<8x2xf32, #tpu.memory_space<vmem>>, vector<1x2xf32>,
    %272 = vector.extract_strided_slice %0 {offsets = [3, 0], sizes = [1, 2], strides = [1, 1]} : vector<8x2xf32> to vector<1x2xf32>
    %273 = arith.mulf %2, %272 : vector<1x2xf32>
    %274 = arith.mulf %26, %213 : vector<1x2xf32>
    %275 = arith.addf %273, %274 : vector<1x2xf32>
    %276 = arith.addf %275, %52 : vector<1x2xf32>
    %277 = arith.negf %276 : vector<1x2xf32>
    %278 = math.exp %277 : vector<1x2xf32>
    %cst_98 = arith.constant 1.000000e+00 : f32
    %279 = vector.broadcast %cst_98 : f32 to vector<1x2xf32>
    %280 = arith.addf %279, %278 : vector<1x2xf32>
    %281 = arith.divf %279, %280 : vector<1x2xf32>
    %282 = arith.mulf %4, %272 : vector<1x2xf32>
    %283 = arith.mulf %28, %213 : vector<1x2xf32>
    %284 = arith.addf %282, %283 : vector<1x2xf32>
    %285 = arith.addf %284, %56 : vector<1x2xf32>
    %286 = arith.negf %285 : vector<1x2xf32>
    %287 = math.exp %286 : vector<1x2xf32>
    %cst_99 = arith.constant 1.000000e+00 : f32
    %288 = vector.broadcast %cst_99 : f32 to vector<1x2xf32>
    %289 = arith.addf %288, %287 : vector<1x2xf32>
    %290 = arith.divf %288, %289 : vector<1x2xf32>
    %291 = arith.mulf %6, %272 : vector<1x2xf32>
    %292 = arith.mulf %30, %213 : vector<1x2xf32>
    %293 = arith.addf %291, %292 : vector<1x2xf32>
    %294 = arith.addf %293, %60 : vector<1x2xf32>
    %295 = math.tanh %294 : vector<1x2xf32>
    %296 = arith.mulf %8, %272 : vector<1x2xf32>
    %297 = arith.mulf %32, %213 : vector<1x2xf32>
    %298 = arith.addf %296, %297 : vector<1x2xf32>
    %299 = arith.addf %298, %64 : vector<1x2xf32>
    %300 = arith.negf %299 : vector<1x2xf32>
    %301 = math.exp %300 : vector<1x2xf32>
    %cst_100 = arith.constant 1.000000e+00 : f32
    %302 = vector.broadcast %cst_100 : f32 to vector<1x2xf32>
    %303 = arith.addf %302, %301 : vector<1x2xf32>
    %304 = arith.divf %302, %303 : vector<1x2xf32>
    %305 = arith.mulf %290, %211 : vector<1x2xf32>
    %306 = arith.mulf %281, %295 : vector<1x2xf32>
    %307 = arith.addf %305, %306 : vector<1x2xf32>
    %308 = math.tanh %307 : vector<1x2xf32>
    %309 = arith.mulf %304, %308 : vector<1x2xf32>
    %310 = arith.mulf %10, %213 : vector<1x2xf32>
    %311 = arith.mulf %34, %250 : vector<1x2xf32>
    %312 = arith.addf %310, %311 : vector<1x2xf32>
    %313 = arith.addf %312, %68 : vector<1x2xf32>
    %314 = arith.negf %313 : vector<1x2xf32>
    %315 = math.exp %314 : vector<1x2xf32>
    %cst_101 = arith.constant 1.000000e+00 : f32
    %316 = vector.broadcast %cst_101 : f32 to vector<1x2xf32>
    %317 = arith.addf %316, %315 : vector<1x2xf32>
    %318 = arith.divf %316, %317 : vector<1x2xf32>
    %319 = arith.mulf %12, %213 : vector<1x2xf32>
    %320 = arith.mulf %36, %250 : vector<1x2xf32>
    %321 = arith.addf %319, %320 : vector<1x2xf32>
    %322 = arith.addf %321, %72 : vector<1x2xf32>
    %323 = arith.negf %322 : vector<1x2xf32>
    %324 = math.exp %323 : vector<1x2xf32>
    %cst_102 = arith.constant 1.000000e+00 : f32
    %325 = vector.broadcast %cst_102 : f32 to vector<1x2xf32>
    %326 = arith.addf %325, %324 : vector<1x2xf32>
    %327 = arith.divf %325, %326 : vector<1x2xf32>
    %328 = arith.mulf %14, %213 : vector<1x2xf32>
    %329 = arith.mulf %38, %250 : vector<1x2xf32>
    %330 = arith.addf %328, %329 : vector<1x2xf32>
    %331 = arith.addf %330, %76 : vector<1x2xf32>
    %332 = math.tanh %331 : vector<1x2xf32>
    %333 = arith.mulf %16, %213 : vector<1x2xf32>
    %334 = arith.mulf %40, %250 : vector<1x2xf32>
    %335 = arith.addf %333, %334 : vector<1x2xf32>
    %336 = arith.addf %335, %80 : vector<1x2xf32>
    %337 = arith.negf %336 : vector<1x2xf32>
    %338 = math.exp %337 : vector<1x2xf32>
    %cst_103 = arith.constant 1.000000e+00 : f32
    %339 = vector.broadcast %cst_103 : f32 to vector<1x2xf32>
    %340 = arith.addf %339, %338 : vector<1x2xf32>
    %341 = arith.divf %339, %340 : vector<1x2xf32>
    %342 = arith.mulf %327, %248 : vector<1x2xf32>
    %343 = arith.mulf %318, %332 : vector<1x2xf32>
    %344 = arith.addf %342, %343 : vector<1x2xf32>
    %345 = math.tanh %344 : vector<1x2xf32>
    %346 = arith.mulf %341, %345 : vector<1x2xf32>
    %347 = arith.mulf %18, %250 : vector<1x2xf32>
    %348 = arith.mulf %42, %270 : vector<1x2xf32>
    %349 = arith.addf %347, %348 : vector<1x2xf32>
    %350 = arith.addf %349, %84 : vector<1x2xf32>
    %351 = arith.negf %350 : vector<1x2xf32>
    %352 = math.exp %351 : vector<1x2xf32>
    %cst_104 = arith.constant 1.000000e+00 : f32
    %353 = vector.broadcast %cst_104 : f32 to vector<1x2xf32>
    %354 = arith.addf %353, %352 : vector<1x2xf32>
    %355 = arith.divf %353, %354 : vector<1x2xf32>
    %356 = arith.mulf %20, %250 : vector<1x2xf32>
    %357 = arith.mulf %44, %270 : vector<1x2xf32>
    %358 = arith.addf %356, %357 : vector<1x2xf32>
    %359 = arith.addf %358, %88 : vector<1x2xf32>
    %360 = arith.negf %359 : vector<1x2xf32>
    %361 = math.exp %360 : vector<1x2xf32>
    %cst_105 = arith.constant 1.000000e+00 : f32
    %362 = vector.broadcast %cst_105 : f32 to vector<1x2xf32>
    %363 = arith.addf %362, %361 : vector<1x2xf32>
    %364 = arith.divf %362, %363 : vector<1x2xf32>
    %365 = arith.mulf %22, %250 : vector<1x2xf32>
    %366 = arith.mulf %46, %270 : vector<1x2xf32>
    %367 = arith.addf %365, %366 : vector<1x2xf32>
    %368 = arith.addf %367, %92 : vector<1x2xf32>
    %369 = math.tanh %368 : vector<1x2xf32>
    %370 = arith.mulf %24, %250 : vector<1x2xf32>
    %371 = arith.mulf %48, %270 : vector<1x2xf32>
    %372 = arith.addf %370, %371 : vector<1x2xf32>
    %373 = arith.addf %372, %96 : vector<1x2xf32>
    %374 = arith.negf %373 : vector<1x2xf32>
    %375 = math.exp %374 : vector<1x2xf32>
    %cst_106 = arith.constant 1.000000e+00 : f32
    %376 = vector.broadcast %cst_106 : f32 to vector<1x2xf32>
    %377 = arith.addf %376, %375 : vector<1x2xf32>
    %378 = arith.divf %376, %377 : vector<1x2xf32>
    %379 = arith.mulf %364, %268 : vector<1x2xf32>
    %380 = arith.mulf %355, %369 : vector<1x2xf32>
    %381 = arith.addf %379, %380 : vector<1x2xf32>
    %382 = math.tanh %381 : vector<1x2xf32>
    %383 = arith.mulf %378, %382 : vector<1x2xf32>
    %c1_107 = arith.constant 1 : index
    %c0_108 = arith.constant 0 : index
    %384 = vector.load %arg2[%c1_107, %c0_108] : memref<8x2xf32, #tpu.memory_space<vmem>>, vector<1x2xf32>
    tpu.vector_store %arg2[%c1_107, %c0_108], %383 {strides = array<i32>} : memref<8x2xf32, #tpu.memory_space<vmem>>, vector<1x2xf32>,
    %385 = vector.extract_strided_slice %0 {offsets = [4, 0], sizes = [1, 2], strides = [1, 1]} : vector<8x2xf32> to vector<1x2xf32>
    %386 = arith.mulf %2, %385 : vector<1x2xf32>
    %387 = arith.mulf %26, %309 : vector<1x2xf32>
    %388 = arith.addf %386, %387 : vector<1x2xf32>
    %389 = arith.addf %388, %52 : vector<1x2xf32>
    %390 = arith.negf %389 : vector<1x2xf32>
    %391 = math.exp %390 : vector<1x2xf32>
    %cst_109 = arith.constant 1.000000e+00 : f32
    %392 = vector.broadcast %cst_109 : f32 to vector<1x2xf32>
    %393 = arith.addf %392, %391 : vector<1x2xf32>
    %394 = arith.divf %392, %393 : vector<1x2xf32>
    %395 = arith.mulf %4, %385 : vector<1x2xf32>
    %396 = arith.mulf %28, %309 : vector<1x2xf32>
    %397 = arith.addf %395, %396 : vector<1x2xf32>
    %398 = arith.addf %397, %56 : vector<1x2xf32>
    %399 = arith.negf %398 : vector<1x2xf32>
    %400 = math.exp %399 : vector<1x2xf32>
    %cst_110 = arith.constant 1.000000e+00 : f32
    %401 = vector.broadcast %cst_110 : f32 to vector<1x2xf32>
    %402 = arith.addf %401, %400 : vector<1x2xf32>
    %403 = arith.divf %401, %402 : vector<1x2xf32>
    %404 = arith.mulf %6, %385 : vector<1x2xf32>
    %405 = arith.mulf %30, %309 : vector<1x2xf32>
    %406 = arith.addf %404, %405 : vector<1x2xf32>
    %407 = arith.addf %406, %60 : vector<1x2xf32>
    %408 = math.tanh %407 : vector<1x2xf32>
    %409 = arith.mulf %8, %385 : vector<1x2xf32>
    %410 = arith.mulf %32, %309 : vector<1x2xf32>
    %411 = arith.addf %409, %410 : vector<1x2xf32>
    %412 = arith.addf %411, %64 : vector<1x2xf32>
    %413 = arith.negf %412 : vector<1x2xf32>
    %414 = math.exp %413 : vector<1x2xf32>
    %cst_111 = arith.constant 1.000000e+00 : f32
    %415 = vector.broadcast %cst_111 : f32 to vector<1x2xf32>
    %416 = arith.addf %415, %414 : vector<1x2xf32>
    %417 = arith.divf %415, %416 : vector<1x2xf32>
    %418 = arith.mulf %403, %307 : vector<1x2xf32>
    %419 = arith.mulf %394, %408 : vector<1x2xf32>
    %420 = arith.addf %418, %419 : vector<1x2xf32>
    %421 = math.tanh %420 : vector<1x2xf32>
    %422 = arith.mulf %417, %421 : vector<1x2xf32>
    %423 = arith.mulf %10, %309 : vector<1x2xf32>
    %424 = arith.mulf %34, %346 : vector<1x2xf32>
    %425 = arith.addf %423, %424 : vector<1x2xf32>
    %426 = arith.addf %425, %68 : vector<1x2xf32>
    %427 = arith.negf %426 : vector<1x2xf32>
    %428 = math.exp %427 : vector<1x2xf32>
    %cst_112 = arith.constant 1.000000e+00 : f32
    %429 = vector.broadcast %cst_112 : f32 to vector<1x2xf32>
    %430 = arith.addf %429, %428 : vector<1x2xf32>
    %431 = arith.divf %429, %430 : vector<1x2xf32>
    %432 = arith.mulf %12, %309 : vector<1x2xf32>
    %433 = arith.mulf %36, %346 : vector<1x2xf32>
    %434 = arith.addf %432, %433 : vector<1x2xf32>
    %435 = arith.addf %434, %72 : vector<1x2xf32>
    %436 = arith.negf %435 : vector<1x2xf32>
    %437 = math.exp %436 : vector<1x2xf32>
    %cst_113 = arith.constant 1.000000e+00 : f32
    %438 = vector.broadcast %cst_113 : f32 to vector<1x2xf32>
    %439 = arith.addf %438, %437 : vector<1x2xf32>
    %440 = arith.divf %438, %439 : vector<1x2xf32>
    %441 = arith.mulf %14, %309 : vector<1x2xf32>
    %442 = arith.mulf %38, %346 : vector<1x2xf32>
    %443 = arith.addf %441, %442 : vector<1x2xf32>
    %444 = arith.addf %443, %76 : vector<1x2xf32>
    %445 = math.tanh %444 : vector<1x2xf32>
    %446 = arith.mulf %16, %309 : vector<1x2xf32>
    %447 = arith.mulf %40, %346 : vector<1x2xf32>
    %448 = arith.addf %446, %447 : vector<1x2xf32>
    %449 = arith.addf %448, %80 : vector<1x2xf32>
    %450 = arith.negf %449 : vector<1x2xf32>
    %451 = math.exp %450 : vector<1x2xf32>
    %cst_114 = arith.constant 1.000000e+00 : f32
    %452 = vector.broadcast %cst_114 : f32 to vector<1x2xf32>
    %453 = arith.addf %452, %451 : vector<1x2xf32>
    %454 = arith.divf %452, %453 : vector<1x2xf32>
    %455 = arith.mulf %440, %344 : vector<1x2xf32>
    %456 = arith.mulf %431, %445 : vector<1x2xf32>
    %457 = arith.addf %455, %456 : vector<1x2xf32>
    %458 = math.tanh %457 : vector<1x2xf32>
    %459 = arith.mulf %454, %458 : vector<1x2xf32>
    %460 = arith.mulf %18, %346 : vector<1x2xf32>
    %461 = arith.mulf %42, %383 : vector<1x2xf32>
    %462 = arith.addf %460, %461 : vector<1x2xf32>
    %463 = arith.addf %462, %84 : vector<1x2xf32>
    %464 = arith.negf %463 : vector<1x2xf32>
    %465 = math.exp %464 : vector<1x2xf32>
    %cst_115 = arith.constant 1.000000e+00 : f32
    %466 = vector.broadcast %cst_115 : f32 to vector<1x2xf32>
    %467 = arith.addf %466, %465 : vector<1x2xf32>
    %468 = arith.divf %466, %467 : vector<1x2xf32>
    %469 = arith.mulf %20, %346 : vector<1x2xf32>
    %470 = arith.mulf %44, %383 : vector<1x2xf32>
    %471 = arith.addf %469, %470 : vector<1x2xf32>
    %472 = arith.addf %471, %88 : vector<1x2xf32>
    %473 = arith.negf %472 : vector<1x2xf32>
    %474 = math.exp %473 : vector<1x2xf32>
    %cst_116 = arith.constant 1.000000e+00 : f32
    %475 = vector.broadcast %cst_116 : f32 to vector<1x2xf32>
    %476 = arith.addf %475, %474 : vector<1x2xf32>
    %477 = arith.divf %475, %476 : vector<1x2xf32>
    %478 = arith.mulf %22, %346 : vector<1x2xf32>
    %479 = arith.mulf %46, %383 : vector<1x2xf32>
    %480 = arith.addf %478, %479 : vector<1x2xf32>
    %481 = arith.addf %480, %92 : vector<1x2xf32>
    %482 = math.tanh %481 : vector<1x2xf32>
    %483 = arith.mulf %24, %346 : vector<1x2xf32>
    %484 = arith.mulf %48, %383 : vector<1x2xf32>
    %485 = arith.addf %483, %484 : vector<1x2xf32>
    %486 = arith.addf %485, %96 : vector<1x2xf32>
    %487 = arith.negf %486 : vector<1x2xf32>
    %488 = math.exp %487 : vector<1x2xf32>
    %cst_117 = arith.constant 1.000000e+00 : f32
    %489 = vector.broadcast %cst_117 : f32 to vector<1x2xf32>
    %490 = arith.addf %489, %488 : vector<1x2xf32>
    %491 = arith.divf %489, %490 : vector<1x2xf32>
    %492 = arith.mulf %477, %381 : vector<1x2xf32>
    %493 = arith.mulf %468, %482 : vector<1x2xf32>
    %494 = arith.addf %492, %493 : vector<1x2xf32>
    %495 = math.tanh %494 : vector<1x2xf32>
    %496 = arith.mulf %491, %495 : vector<1x2xf32>
    %c2_118 = arith.constant 2 : index
    %c0_119 = arith.constant 0 : index
    %497 = vector.load %arg2[%c2_118, %c0_119] : memref<8x2xf32, #tpu.memory_space<vmem>>, vector<1x2xf32>
    tpu.vector_store %arg2[%c2_118, %c0_119], %496 {strides = array<i32>} : memref<8x2xf32, #tpu.memory_space<vmem>>, vector<1x2xf32>,
    %498 = vector.extract_strided_slice %0 {offsets = [5, 0], sizes = [1, 2], strides = [1, 1]} : vector<8x2xf32> to vector<1x2xf32>
    %499 = arith.mulf %2, %498 : vector<1x2xf32>
    %500 = arith.mulf %26, %422 : vector<1x2xf32>
    %501 = arith.addf %499, %500 : vector<1x2xf32>
    %502 = arith.addf %501, %52 : vector<1x2xf32>
    %503 = arith.negf %502 : vector<1x2xf32>
    %504 = math.exp %503 : vector<1x2xf32>
    %cst_120 = arith.constant 1.000000e+00 : f32
    %505 = vector.broadcast %cst_120 : f32 to vector<1x2xf32>
    %506 = arith.addf %505, %504 : vector<1x2xf32>
    %507 = arith.divf %505, %506 : vector<1x2xf32>
    %508 = arith.mulf %4, %498 : vector<1x2xf32>
    %509 = arith.mulf %28, %422 : vector<1x2xf32>
    %510 = arith.addf %508, %509 : vector<1x2xf32>
    %511 = arith.addf %510, %56 : vector<1x2xf32>
    %512 = arith.negf %511 : vector<1x2xf32>
    %513 = math.exp %512 : vector<1x2xf32>
    %cst_121 = arith.constant 1.000000e+00 : f32
    %514 = vector.broadcast %cst_121 : f32 to vector<1x2xf32>
    %515 = arith.addf %514, %513 : vector<1x2xf32>
    %516 = arith.divf %514, %515 : vector<1x2xf32>
    %517 = arith.mulf %6, %498 : vector<1x2xf32>
    %518 = arith.mulf %30, %422 : vector<1x2xf32>
    %519 = arith.addf %517, %518 : vector<1x2xf32>
    %520 = arith.addf %519, %60 : vector<1x2xf32>
    %521 = math.tanh %520 : vector<1x2xf32>
    %522 = arith.mulf %8, %498 : vector<1x2xf32>
    %523 = arith.mulf %32, %422 : vector<1x2xf32>
    %524 = arith.addf %522, %523 : vector<1x2xf32>
    %525 = arith.addf %524, %64 : vector<1x2xf32>
    %526 = arith.negf %525 : vector<1x2xf32>
    %527 = math.exp %526 : vector<1x2xf32>
    %cst_122 = arith.constant 1.000000e+00 : f32
    %528 = vector.broadcast %cst_122 : f32 to vector<1x2xf32>
    %529 = arith.addf %528, %527 : vector<1x2xf32>
    %530 = arith.divf %528, %529 : vector<1x2xf32>
    %531 = arith.mulf %516, %420 : vector<1x2xf32>
    %532 = arith.mulf %507, %521 : vector<1x2xf32>
    %533 = arith.addf %531, %532 : vector<1x2xf32>
    %534 = math.tanh %533 : vector<1x2xf32>
    %535 = arith.mulf %530, %534 : vector<1x2xf32>
    %536 = arith.mulf %10, %422 : vector<1x2xf32>
    %537 = arith.mulf %34, %459 : vector<1x2xf32>
    %538 = arith.addf %536, %537 : vector<1x2xf32>
    %539 = arith.addf %538, %68 : vector<1x2xf32>
    %540 = arith.negf %539 : vector<1x2xf32>
    %541 = math.exp %540 : vector<1x2xf32>
    %cst_123 = arith.constant 1.000000e+00 : f32
    %542 = vector.broadcast %cst_123 : f32 to vector<1x2xf32>
    %543 = arith.addf %542, %541 : vector<1x2xf32>
    %544 = arith.divf %542, %543 : vector<1x2xf32>
    %545 = arith.mulf %12, %422 : vector<1x2xf32>
    %546 = arith.mulf %36, %459 : vector<1x2xf32>
    %547 = arith.addf %545, %546 : vector<1x2xf32>
    %548 = arith.addf %547, %72 : vector<1x2xf32>
    %549 = arith.negf %548 : vector<1x2xf32>
    %550 = math.exp %549 : vector<1x2xf32>
    %cst_124 = arith.constant 1.000000e+00 : f32
    %551 = vector.broadcast %cst_124 : f32 to vector<1x2xf32>
    %552 = arith.addf %551, %550 : vector<1x2xf32>
    %553 = arith.divf %551, %552 : vector<1x2xf32>
    %554 = arith.mulf %14, %422 : vector<1x2xf32>
    %555 = arith.mulf %38, %459 : vector<1x2xf32>
    %556 = arith.addf %554, %555 : vector<1x2xf32>
    %557 = arith.addf %556, %76 : vector<1x2xf32>
    %558 = math.tanh %557 : vector<1x2xf32>
    %559 = arith.mulf %16, %422 : vector<1x2xf32>
    %560 = arith.mulf %40, %459 : vector<1x2xf32>
    %561 = arith.addf %559, %560 : vector<1x2xf32>
    %562 = arith.addf %561, %80 : vector<1x2xf32>
    %563 = arith.negf %562 : vector<1x2xf32>
    %564 = math.exp %563 : vector<1x2xf32>
    %cst_125 = arith.constant 1.000000e+00 : f32
    %565 = vector.broadcast %cst_125 : f32 to vector<1x2xf32>
    %566 = arith.addf %565, %564 : vector<1x2xf32>
    %567 = arith.divf %565, %566 : vector<1x2xf32>
    %568 = arith.mulf %553, %457 : vector<1x2xf32>
    %569 = arith.mulf %544, %558 : vector<1x2xf32>
    %570 = arith.addf %568, %569 : vector<1x2xf32>
    %571 = math.tanh %570 : vector<1x2xf32>
    %572 = arith.mulf %567, %571 : vector<1x2xf32>
    %573 = arith.mulf %18, %459 : vector<1x2xf32>
    %574 = arith.mulf %42, %496 : vector<1x2xf32>
    %575 = arith.addf %573, %574 : vector<1x2xf32>
    %576 = arith.addf %575, %84 : vector<1x2xf32>
    %577 = arith.negf %576 : vector<1x2xf32>
    %578 = math.exp %577 : vector<1x2xf32>
    %cst_126 = arith.constant 1.000000e+00 : f32
    %579 = vector.broadcast %cst_126 : f32 to vector<1x2xf32>
    %580 = arith.addf %579, %578 : vector<1x2xf32>
    %581 = arith.divf %579, %580 : vector<1x2xf32>
    %582 = arith.mulf %20, %459 : vector<1x2xf32>
    %583 = arith.mulf %44, %496 : vector<1x2xf32>
    %584 = arith.addf %582, %583 : vector<1x2xf32>
    %585 = arith.addf %584, %88 : vector<1x2xf32>
    %586 = arith.negf %585 : vector<1x2xf32>
    %587 = math.exp %586 : vector<1x2xf32>
    %cst_127 = arith.constant 1.000000e+00 : f32
    %588 = vector.broadcast %cst_127 : f32 to vector<1x2xf32>
    %589 = arith.addf %588, %587 : vector<1x2xf32>
    %590 = arith.divf %588, %589 : vector<1x2xf32>
    %591 = arith.mulf %22, %459 : vector<1x2xf32>
    %592 = arith.mulf %46, %496 : vector<1x2xf32>
    %593 = arith.addf %591, %592 : vector<1x2xf32>
    %594 = arith.addf %593, %92 : vector<1x2xf32>
    %595 = math.tanh %594 : vector<1x2xf32>
    %596 = arith.mulf %24, %459 : vector<1x2xf32>
    %597 = arith.mulf %48, %496 : vector<1x2xf32>
    %598 = arith.addf %596, %597 : vector<1x2xf32>
    %599 = arith.addf %598, %96 : vector<1x2xf32>
    %600 = arith.negf %599 : vector<1x2xf32>
    %601 = math.exp %600 : vector<1x2xf32>
    %cst_128 = arith.constant 1.000000e+00 : f32
    %602 = vector.broadcast %cst_128 : f32 to vector<1x2xf32>
    %603 = arith.addf %602, %601 : vector<1x2xf32>
    %604 = arith.divf %602, %603 : vector<1x2xf32>
    %605 = arith.mulf %590, %494 : vector<1x2xf32>
    %606 = arith.mulf %581, %595 : vector<1x2xf32>
    %607 = arith.addf %605, %606 : vector<1x2xf32>
    %608 = math.tanh %607 : vector<1x2xf32>
    %609 = arith.mulf %604, %608 : vector<1x2xf32>
    %c3_129 = arith.constant 3 : index
    %c0_130 = arith.constant 0 : index
    %610 = vector.load %arg2[%c3_129, %c0_130] : memref<8x2xf32, #tpu.memory_space<vmem>>, vector<1x2xf32>
    tpu.vector_store %arg2[%c3_129, %c0_130], %609 {strides = array<i32>} : memref<8x2xf32, #tpu.memory_space<vmem>>, vector<1x2xf32>,
    %611 = vector.extract_strided_slice %0 {offsets = [6, 0], sizes = [1, 2], strides = [1, 1]} : vector<8x2xf32> to vector<1x2xf32>
    %612 = arith.mulf %2, %611 : vector<1x2xf32>
    %613 = arith.mulf %26, %535 : vector<1x2xf32>
    %614 = arith.addf %612, %613 : vector<1x2xf32>
    %615 = arith.addf %614, %52 : vector<1x2xf32>
    %616 = arith.negf %615 : vector<1x2xf32>
    %617 = math.exp %616 : vector<1x2xf32>
    %cst_131 = arith.constant 1.000000e+00 : f32
    %618 = vector.broadcast %cst_131 : f32 to vector<1x2xf32>
    %619 = arith.addf %618, %617 : vector<1x2xf32>
    %620 = arith.divf %618, %619 : vector<1x2xf32>
    %621 = arith.mulf %4, %611 : vector<1x2xf32>
    %622 = arith.mulf %28, %535 : vector<1x2xf32>
    %623 = arith.addf %621, %622 : vector<1x2xf32>
    %624 = arith.addf %623, %56 : vector<1x2xf32>
    %625 = arith.negf %624 : vector<1x2xf32>
    %626 = math.exp %625 : vector<1x2xf32>
    %cst_132 = arith.constant 1.000000e+00 : f32
    %627 = vector.broadcast %cst_132 : f32 to vector<1x2xf32>
    %628 = arith.addf %627, %626 : vector<1x2xf32>
    %629 = arith.divf %627, %628 : vector<1x2xf32>
    %630 = arith.mulf %6, %611 : vector<1x2xf32>
    %631 = arith.mulf %30, %535 : vector<1x2xf32>
    %632 = arith.addf %630, %631 : vector<1x2xf32>
    %633 = arith.addf %632, %60 : vector<1x2xf32>
    %634 = math.tanh %633 : vector<1x2xf32>
    %635 = arith.mulf %8, %611 : vector<1x2xf32>
    %636 = arith.mulf %32, %535 : vector<1x2xf32>
    %637 = arith.addf %635, %636 : vector<1x2xf32>
    %638 = arith.addf %637, %64 : vector<1x2xf32>
    %639 = arith.negf %638 : vector<1x2xf32>
    %640 = math.exp %639 : vector<1x2xf32>
    %cst_133 = arith.constant 1.000000e+00 : f32
    %641 = vector.broadcast %cst_133 : f32 to vector<1x2xf32>
    %642 = arith.addf %641, %640 : vector<1x2xf32>
    %643 = arith.divf %641, %642 : vector<1x2xf32>
    %644 = arith.mulf %629, %533 : vector<1x2xf32>
    %645 = arith.mulf %620, %634 : vector<1x2xf32>
    %646 = arith.addf %644, %645 : vector<1x2xf32>
    %647 = math.tanh %646 : vector<1x2xf32>
    %648 = arith.mulf %643, %647 : vector<1x2xf32>
    %649 = arith.mulf %10, %535 : vector<1x2xf32>
    %650 = arith.mulf %34, %572 : vector<1x2xf32>
    %651 = arith.addf %649, %650 : vector<1x2xf32>
    %652 = arith.addf %651, %68 : vector<1x2xf32>
    %653 = arith.negf %652 : vector<1x2xf32>
    %654 = math.exp %653 : vector<1x2xf32>
    %cst_134 = arith.constant 1.000000e+00 : f32
    %655 = vector.broadcast %cst_134 : f32 to vector<1x2xf32>
    %656 = arith.addf %655, %654 : vector<1x2xf32>
    %657 = arith.divf %655, %656 : vector<1x2xf32>
    %658 = arith.mulf %12, %535 : vector<1x2xf32>
    %659 = arith.mulf %36, %572 : vector<1x2xf32>
    %660 = arith.addf %658, %659 : vector<1x2xf32>
    %661 = arith.addf %660, %72 : vector<1x2xf32>
    %662 = arith.negf %661 : vector<1x2xf32>
    %663 = math.exp %662 : vector<1x2xf32>
    %cst_135 = arith.constant 1.000000e+00 : f32
    %664 = vector.broadcast %cst_135 : f32 to vector<1x2xf32>
    %665 = arith.addf %664, %663 : vector<1x2xf32>
    %666 = arith.divf %664, %665 : vector<1x2xf32>
    %667 = arith.mulf %14, %535 : vector<1x2xf32>
    %668 = arith.mulf %38, %572 : vector<1x2xf32>
    %669 = arith.addf %667, %668 : vector<1x2xf32>
    %670 = arith.addf %669, %76 : vector<1x2xf32>
    %671 = math.tanh %670 : vector<1x2xf32>
    %672 = arith.mulf %16, %535 : vector<1x2xf32>
    %673 = arith.mulf %40, %572 : vector<1x2xf32>
    %674 = arith.addf %672, %673 : vector<1x2xf32>
    %675 = arith.addf %674, %80 : vector<1x2xf32>
    %676 = arith.negf %675 : vector<1x2xf32>
    %677 = math.exp %676 : vector<1x2xf32>
    %cst_136 = arith.constant 1.000000e+00 : f32
    %678 = vector.broadcast %cst_136 : f32 to vector<1x2xf32>
    %679 = arith.addf %678, %677 : vector<1x2xf32>
    %680 = arith.divf %678, %679 : vector<1x2xf32>
    %681 = arith.mulf %666, %570 : vector<1x2xf32>
    %682 = arith.mulf %657, %671 : vector<1x2xf32>
    %683 = arith.addf %681, %682 : vector<1x2xf32>
    %684 = math.tanh %683 : vector<1x2xf32>
    %685 = arith.mulf %680, %684 : vector<1x2xf32>
    %686 = arith.mulf %18, %572 : vector<1x2xf32>
    %687 = arith.mulf %42, %609 : vector<1x2xf32>
    %688 = arith.addf %686, %687 : vector<1x2xf32>
    %689 = arith.addf %688, %84 : vector<1x2xf32>
    %690 = arith.negf %689 : vector<1x2xf32>
    %691 = math.exp %690 : vector<1x2xf32>
    %cst_137 = arith.constant 1.000000e+00 : f32
    %692 = vector.broadcast %cst_137 : f32 to vector<1x2xf32>
    %693 = arith.addf %692, %691 : vector<1x2xf32>
    %694 = arith.divf %692, %693 : vector<1x2xf32>
    %695 = arith.mulf %20, %572 : vector<1x2xf32>
    %696 = arith.mulf %44, %609 : vector<1x2xf32>
    %697 = arith.addf %695, %696 : vector<1x2xf32>
    %698 = arith.addf %697, %88 : vector<1x2xf32>
    %699 = arith.negf %698 : vector<1x2xf32>
    %700 = math.exp %699 : vector<1x2xf32>
    %cst_138 = arith.constant 1.000000e+00 : f32
    %701 = vector.broadcast %cst_138 : f32 to vector<1x2xf32>
    %702 = arith.addf %701, %700 : vector<1x2xf32>
    %703 = arith.divf %701, %702 : vector<1x2xf32>
    %704 = arith.mulf %22, %572 : vector<1x2xf32>
    %705 = arith.mulf %46, %609 : vector<1x2xf32>
    %706 = arith.addf %704, %705 : vector<1x2xf32>
    %707 = arith.addf %706, %92 : vector<1x2xf32>
    %708 = math.tanh %707 : vector<1x2xf32>
    %709 = arith.mulf %24, %572 : vector<1x2xf32>
    %710 = arith.mulf %48, %609 : vector<1x2xf32>
    %711 = arith.addf %709, %710 : vector<1x2xf32>
    %712 = arith.addf %711, %96 : vector<1x2xf32>
    %713 = arith.negf %712 : vector<1x2xf32>
    %714 = math.exp %713 : vector<1x2xf32>
    %cst_139 = arith.constant 1.000000e+00 : f32
    %715 = vector.broadcast %cst_139 : f32 to vector<1x2xf32>
    %716 = arith.addf %715, %714 : vector<1x2xf32>
    %717 = arith.divf %715, %716 : vector<1x2xf32>
    %718 = arith.mulf %703, %607 : vector<1x2xf32>
    %719 = arith.mulf %694, %708 : vector<1x2xf32>
    %720 = arith.addf %718, %719 : vector<1x2xf32>
    %721 = math.tanh %720 : vector<1x2xf32>
    %722 = arith.mulf %717, %721 : vector<1x2xf32>
    %c4_140 = arith.constant 4 : index
    %c0_141 = arith.constant 0 : index
    %723 = vector.load %arg2[%c4_140, %c0_141] : memref<8x2xf32, #tpu.memory_space<vmem>>, vector<1x2xf32>
    tpu.vector_store %arg2[%c4_140, %c0_141], %722 {strides = array<i32>} : memref<8x2xf32, #tpu.memory_space<vmem>>, vector<1x2xf32>,
    %724 = vector.extract_strided_slice %0 {offsets = [7, 0], sizes = [1, 2], strides = [1, 1]} : vector<8x2xf32> to vector<1x2xf32>
    %725 = arith.mulf %2, %724 : vector<1x2xf32>
    %726 = arith.mulf %26, %648 : vector<1x2xf32>
    %727 = arith.addf %725, %726 : vector<1x2xf32>
    %728 = arith.addf %727, %52 : vector<1x2xf32>
    %729 = arith.negf %728 : vector<1x2xf32>
    %730 = math.exp %729 : vector<1x2xf32>
    %cst_142 = arith.constant 1.000000e+00 : f32
    %731 = vector.broadcast %cst_142 : f32 to vector<1x2xf32>
    %732 = arith.addf %731, %730 : vector<1x2xf32>
    %733 = arith.divf %731, %732 : vector<1x2xf32>
    %734 = arith.mulf %4, %724 : vector<1x2xf32>
    %735 = arith.mulf %28, %648 : vector<1x2xf32>
    %736 = arith.addf %734, %735 : vector<1x2xf32>
    %737 = arith.addf %736, %56 : vector<1x2xf32>
    %738 = arith.negf %737 : vector<1x2xf32>
    %739 = math.exp %738 : vector<1x2xf32>
    %cst_143 = arith.constant 1.000000e+00 : f32
    %740 = vector.broadcast %cst_143 : f32 to vector<1x2xf32>
    %741 = arith.addf %740, %739 : vector<1x2xf32>
    %742 = arith.divf %740, %741 : vector<1x2xf32>
    %743 = arith.mulf %6, %724 : vector<1x2xf32>
    %744 = arith.mulf %30, %648 : vector<1x2xf32>
    %745 = arith.addf %743, %744 : vector<1x2xf32>
    %746 = arith.addf %745, %60 : vector<1x2xf32>
    %747 = math.tanh %746 : vector<1x2xf32>
    %748 = arith.mulf %8, %724 : vector<1x2xf32>
    %749 = arith.mulf %32, %648 : vector<1x2xf32>
    %750 = arith.addf %748, %749 : vector<1x2xf32>
    %751 = arith.addf %750, %64 : vector<1x2xf32>
    %752 = arith.negf %751 : vector<1x2xf32>
    %753 = math.exp %752 : vector<1x2xf32>
    %cst_144 = arith.constant 1.000000e+00 : f32
    %754 = vector.broadcast %cst_144 : f32 to vector<1x2xf32>
    %755 = arith.addf %754, %753 : vector<1x2xf32>
    %756 = arith.divf %754, %755 : vector<1x2xf32>
    %757 = arith.mulf %742, %646 : vector<1x2xf32>
    %758 = arith.mulf %733, %747 : vector<1x2xf32>
    %759 = arith.addf %757, %758 : vector<1x2xf32>
    %760 = math.tanh %759 : vector<1x2xf32>
    %761 = arith.mulf %756, %760 : vector<1x2xf32>
    %762 = arith.mulf %10, %648 : vector<1x2xf32>
    %763 = arith.mulf %34, %685 : vector<1x2xf32>
    %764 = arith.addf %762, %763 : vector<1x2xf32>
    %765 = arith.addf %764, %68 : vector<1x2xf32>
    %766 = arith.negf %765 : vector<1x2xf32>
    %767 = math.exp %766 : vector<1x2xf32>
    %cst_145 = arith.constant 1.000000e+00 : f32
    %768 = vector.broadcast %cst_145 : f32 to vector<1x2xf32>
    %769 = arith.addf %768, %767 : vector<1x2xf32>
    %770 = arith.divf %768, %769 : vector<1x2xf32>
    %771 = arith.mulf %12, %648 : vector<1x2xf32>
    %772 = arith.mulf %36, %685 : vector<1x2xf32>
    %773 = arith.addf %771, %772 : vector<1x2xf32>
    %774 = arith.addf %773, %72 : vector<1x2xf32>
    %775 = arith.negf %774 : vector<1x2xf32>
    %776 = math.exp %775 : vector<1x2xf32>
    %cst_146 = arith.constant 1.000000e+00 : f32
    %777 = vector.broadcast %cst_146 : f32 to vector<1x2xf32>
    %778 = arith.addf %777, %776 : vector<1x2xf32>
    %779 = arith.divf %777, %778 : vector<1x2xf32>
    %780 = arith.mulf %14, %648 : vector<1x2xf32>
    %781 = arith.mulf %38, %685 : vector<1x2xf32>
    %782 = arith.addf %780, %781 : vector<1x2xf32>
    %783 = arith.addf %782, %76 : vector<1x2xf32>
    %784 = math.tanh %783 : vector<1x2xf32>
    %785 = arith.mulf %16, %648 : vector<1x2xf32>
    %786 = arith.mulf %40, %685 : vector<1x2xf32>
    %787 = arith.addf %785, %786 : vector<1x2xf32>
    %788 = arith.addf %787, %80 : vector<1x2xf32>
    %789 = arith.negf %788 : vector<1x2xf32>
    %790 = math.exp %789 : vector<1x2xf32>
    %cst_147 = arith.constant 1.000000e+00 : f32
    %791 = vector.broadcast %cst_147 : f32 to vector<1x2xf32>
    %792 = arith.addf %791, %790 : vector<1x2xf32>
    %793 = arith.divf %791, %792 : vector<1x2xf32>
    %794 = arith.mulf %779, %683 : vector<1x2xf32>
    %795 = arith.mulf %770, %784 : vector<1x2xf32>
    %796 = arith.addf %794, %795 : vector<1x2xf32>
    %797 = math.tanh %796 : vector<1x2xf32>
    %798 = arith.mulf %793, %797 : vector<1x2xf32>
    %799 = arith.mulf %18, %685 : vector<1x2xf32>
    %800 = arith.mulf %42, %722 : vector<1x2xf32>
    %801 = arith.addf %799, %800 : vector<1x2xf32>
    %802 = arith.addf %801, %84 : vector<1x2xf32>
    %803 = arith.negf %802 : vector<1x2xf32>
    %804 = math.exp %803 : vector<1x2xf32>
    %cst_148 = arith.constant 1.000000e+00 : f32
    %805 = vector.broadcast %cst_148 : f32 to vector<1x2xf32>
    %806 = arith.addf %805, %804 : vector<1x2xf32>
    %807 = arith.divf %805, %806 : vector<1x2xf32>
    %808 = arith.mulf %20, %685 : vector<1x2xf32>
    %809 = arith.mulf %44, %722 : vector<1x2xf32>
    %810 = arith.addf %808, %809 : vector<1x2xf32>
    %811 = arith.addf %810, %88 : vector<1x2xf32>
    %812 = arith.negf %811 : vector<1x2xf32>
    %813 = math.exp %812 : vector<1x2xf32>
    %cst_149 = arith.constant 1.000000e+00 : f32
    %814 = vector.broadcast %cst_149 : f32 to vector<1x2xf32>
    %815 = arith.addf %814, %813 : vector<1x2xf32>
    %816 = arith.divf %814, %815 : vector<1x2xf32>
    %817 = arith.mulf %22, %685 : vector<1x2xf32>
    %818 = arith.mulf %46, %722 : vector<1x2xf32>
    %819 = arith.addf %817, %818 : vector<1x2xf32>
    %820 = arith.addf %819, %92 : vector<1x2xf32>
    %821 = math.tanh %820 : vector<1x2xf32>
    %822 = arith.mulf %24, %685 : vector<1x2xf32>
    %823 = arith.mulf %48, %722 : vector<1x2xf32>
    %824 = arith.addf %822, %823 : vector<1x2xf32>
    %825 = arith.addf %824, %96 : vector<1x2xf32>
    %826 = arith.negf %825 : vector<1x2xf32>
    %827 = math.exp %826 : vector<1x2xf32>
    %cst_150 = arith.constant 1.000000e+00 : f32
    %828 = vector.broadcast %cst_150 : f32 to vector<1x2xf32>
    %829 = arith.addf %828, %827 : vector<1x2xf32>
    %830 = arith.divf %828, %829 : vector<1x2xf32>
    %831 = arith.mulf %816, %720 : vector<1x2xf32>
    %832 = arith.mulf %807, %821 : vector<1x2xf32>
    %833 = arith.addf %831, %832 : vector<1x2xf32>
    %834 = math.tanh %833 : vector<1x2xf32>
    %835 = arith.mulf %830, %834 : vector<1x2xf32>
    %c5_151 = arith.constant 5 : index
    %c0_152 = arith.constant 0 : index
    %836 = vector.load %arg2[%c5_151, %c0_152] : memref<8x2xf32, #tpu.memory_space<vmem>>, vector<1x2xf32>
    tpu.vector_store %arg2[%c5_151, %c0_152], %835 {strides = array<i32>} : memref<8x2xf32, #tpu.memory_space<vmem>>, vector<1x2xf32>,
    %837 = arith.mulf %10, %761 : vector<1x2xf32>
    %838 = arith.mulf %34, %798 : vector<1x2xf32>
    %839 = arith.addf %837, %838 : vector<1x2xf32>
    %840 = arith.addf %839, %68 : vector<1x2xf32>
    %841 = arith.negf %840 : vector<1x2xf32>
    %842 = math.exp %841 : vector<1x2xf32>
    %cst_153 = arith.constant 1.000000e+00 : f32
    %843 = vector.broadcast %cst_153 : f32 to vector<1x2xf32>
    %844 = arith.addf %843, %842 : vector<1x2xf32>
    %845 = arith.divf %843, %844 : vector<1x2xf32>
    %846 = arith.mulf %12, %761 : vector<1x2xf32>
    %847 = arith.mulf %36, %798 : vector<1x2xf32>
    %848 = arith.addf %846, %847 : vector<1x2xf32>
    %849 = arith.addf %848, %72 : vector<1x2xf32>
    %850 = arith.negf %849 : vector<1x2xf32>
    %851 = math.exp %850 : vector<1x2xf32>
    %cst_154 = arith.constant 1.000000e+00 : f32
    %852 = vector.broadcast %cst_154 : f32 to vector<1x2xf32>
    %853 = arith.addf %852, %851 : vector<1x2xf32>
    %854 = arith.divf %852, %853 : vector<1x2xf32>
    %855 = arith.mulf %14, %761 : vector<1x2xf32>
    %856 = arith.mulf %38, %798 : vector<1x2xf32>
    %857 = arith.addf %855, %856 : vector<1x2xf32>
    %858 = arith.addf %857, %76 : vector<1x2xf32>
    %859 = math.tanh %858 : vector<1x2xf32>
    %860 = arith.mulf %16, %761 : vector<1x2xf32>
    %861 = arith.mulf %40, %798 : vector<1x2xf32>
    %862 = arith.addf %860, %861 : vector<1x2xf32>
    %863 = arith.addf %862, %80 : vector<1x2xf32>
    %864 = arith.negf %863 : vector<1x2xf32>
    %865 = math.exp %864 : vector<1x2xf32>
    %cst_155 = arith.constant 1.000000e+00 : f32
    %866 = vector.broadcast %cst_155 : f32 to vector<1x2xf32>
    %867 = arith.addf %866, %865 : vector<1x2xf32>
    %868 = arith.divf %866, %867 : vector<1x2xf32>
    %869 = arith.mulf %854, %796 : vector<1x2xf32>
    %870 = arith.mulf %845, %859 : vector<1x2xf32>
    %871 = arith.addf %869, %870 : vector<1x2xf32>
    %872 = math.tanh %871 : vector<1x2xf32>
    %873 = arith.mulf %868, %872 : vector<1x2xf32>
    %874 = arith.mulf %18, %798 : vector<1x2xf32>
    %875 = arith.mulf %42, %835 : vector<1x2xf32>
    %876 = arith.addf %874, %875 : vector<1x2xf32>
    %877 = arith.addf %876, %84 : vector<1x2xf32>
    %878 = arith.negf %877 : vector<1x2xf32>
    %879 = math.exp %878 : vector<1x2xf32>
    %cst_156 = arith.constant 1.000000e+00 : f32
    %880 = vector.broadcast %cst_156 : f32 to vector<1x2xf32>
    %881 = arith.addf %880, %879 : vector<1x2xf32>
    %882 = arith.divf %880, %881 : vector<1x2xf32>
    %883 = arith.mulf %20, %798 : vector<1x2xf32>
    %884 = arith.mulf %44, %835 : vector<1x2xf32>
    %885 = arith.addf %883, %884 : vector<1x2xf32>
    %886 = arith.addf %885, %88 : vector<1x2xf32>
    %887 = arith.negf %886 : vector<1x2xf32>
    %888 = math.exp %887 : vector<1x2xf32>
    %cst_157 = arith.constant 1.000000e+00 : f32
    %889 = vector.broadcast %cst_157 : f32 to vector<1x2xf32>
    %890 = arith.addf %889, %888 : vector<1x2xf32>
    %891 = arith.divf %889, %890 : vector<1x2xf32>
    %892 = arith.mulf %22, %798 : vector<1x2xf32>
    %893 = arith.mulf %46, %835 : vector<1x2xf32>
    %894 = arith.addf %892, %893 : vector<1x2xf32>
    %895 = arith.addf %894, %92 : vector<1x2xf32>
    %896 = math.tanh %895 : vector<1x2xf32>
    %897 = arith.mulf %24, %798 : vector<1x2xf32>
    %898 = arith.mulf %48, %835 : vector<1x2xf32>
    %899 = arith.addf %897, %898 : vector<1x2xf32>
    %900 = arith.addf %899, %96 : vector<1x2xf32>
    %901 = arith.negf %900 : vector<1x2xf32>
    %902 = math.exp %901 : vector<1x2xf32>
    %cst_158 = arith.constant 1.000000e+00 : f32
    %903 = vector.broadcast %cst_158 : f32 to vector<1x2xf32>
    %904 = arith.addf %903, %902 : vector<1x2xf32>
    %905 = arith.divf %903, %904 : vector<1x2xf32>
    %906 = arith.mulf %891, %833 : vector<1x2xf32>
    %907 = arith.mulf %882, %896 : vector<1x2xf32>
    %908 = arith.addf %906, %907 : vector<1x2xf32>
    %909 = math.tanh %908 : vector<1x2xf32>
    %910 = arith.mulf %905, %909 : vector<1x2xf32>
    %c6_159 = arith.constant 6 : index
    %c0_160 = arith.constant 0 : index
    %911 = vector.load %arg2[%c6_159, %c0_160] : memref<8x2xf32, #tpu.memory_space<vmem>>, vector<1x2xf32>
    tpu.vector_store %arg2[%c6_159, %c0_160], %910 {strides = array<i32>} : memref<8x2xf32, #tpu.memory_space<vmem>>, vector<1x2xf32>,
    %912 = arith.mulf %18, %873 : vector<1x2xf32>
    %913 = arith.mulf %42, %910 : vector<1x2xf32>
    %914 = arith.addf %912, %913 : vector<1x2xf32>
    %915 = arith.addf %914, %84 : vector<1x2xf32>
    %916 = arith.negf %915 : vector<1x2xf32>
    %917 = math.exp %916 : vector<1x2xf32>
    %cst_161 = arith.constant 1.000000e+00 : f32
    %918 = vector.broadcast %cst_161 : f32 to vector<1x2xf32>
    %919 = arith.addf %918, %917 : vector<1x2xf32>
    %920 = arith.divf %918, %919 : vector<1x2xf32>
    %921 = arith.mulf %20, %873 : vector<1x2xf32>
    %922 = arith.mulf %44, %910 : vector<1x2xf32>
    %923 = arith.addf %921, %922 : vector<1x2xf32>
    %924 = arith.addf %923, %88 : vector<1x2xf32>
    %925 = arith.negf %924 : vector<1x2xf32>
    %926 = math.exp %925 : vector<1x2xf32>
    %cst_162 = arith.constant 1.000000e+00 : f32
    %927 = vector.broadcast %cst_162 : f32 to vector<1x2xf32>
    %928 = arith.addf %927, %926 : vector<1x2xf32>
    %929 = arith.divf %927, %928 : vector<1x2xf32>
    %930 = arith.mulf %22, %873 : vector<1x2xf32>
    %931 = arith.mulf %46, %910 : vector<1x2xf32>
    %932 = arith.addf %930, %931 : vector<1x2xf32>
    %933 = arith.addf %932, %92 : vector<1x2xf32>
    %934 = math.tanh %933 : vector<1x2xf32>
    %935 = arith.mulf %24, %873 : vector<1x2xf32>
    %936 = arith.mulf %48, %910 : vector<1x2xf32>
    %937 = arith.addf %935, %936 : vector<1x2xf32>
    %938 = arith.addf %937, %96 : vector<1x2xf32>
    %939 = arith.negf %938 : vector<1x2xf32>
    %940 = math.exp %939 : vector<1x2xf32>
    %cst_163 = arith.constant 1.000000e+00 : f32
    %941 = vector.broadcast %cst_163 : f32 to vector<1x2xf32>
    %942 = arith.addf %941, %940 : vector<1x2xf32>
    %943 = arith.divf %941, %942 : vector<1x2xf32>
    %944 = arith.mulf %929, %908 : vector<1x2xf32>
    %945 = arith.mulf %920, %934 : vector<1x2xf32>
    %946 = arith.addf %944, %945 : vector<1x2xf32>
    %947 = math.tanh %946 : vector<1x2xf32>
    %948 = arith.mulf %943, %947 : vector<1x2xf32>
    %c7_164 = arith.constant 7 : index
    %c0_165 = arith.constant 0 : index
    %949 = vector.load %arg2[%c7_164, %c0_165] : memref<8x2xf32, #tpu.memory_space<vmem>>, vector<1x2xf32>
    tpu.vector_store %arg2[%c7_164, %c0_165], %948 {strides = array<i32>} : memref<8x2xf32, #tpu.memory_space<vmem>>, vector<1x2xf32>,
    return
  }
}

</mosaic_0001>

<bundles_post_ra>
// kernel: _decoder_forward_impl.1
= control target key start
LH: loop header
LB: loop body
LE: loop exit
PB: predicated region body
PF: predicated region fallthrough
CT: control target
= control target key end

     0   :  { %7 = vsyncpa [#allocation3], 0  ;;  %s2436_s0 = inlined_call_operand.vmem [shape: f32[3,16], index: 0, kind: input, shape index: {}]   ;;  %s2437_s1 = inlined_call_operand.vmem [shape: f32[8,2], index: 1, kind: input, shape index: {}]   ;;  %s2438_s2 = inlined_call_operand.vmem [shape: f32[8,2], index: 2, kind: output, shape index: {}]  }
   0x1   :  { %s14_s11 = sshll.u32 %s2436_s0, 4  ;;  %s15_s11 = int_to_ptr.vmem [resolvable:$true] %s14_s11 }
   0x2   :  { %s1825_s12 = scalar_lea.vmem %s15_s11, 64  ;;  %p1830_p1 = scmp.lt.s32.totalorder %s15_s11, %s15_s11 }
   0x3   :  { %p1826_p0 = scmp.ne.s32.totalorder %s15_s11, %s1825_s12  ;;  %p1831_p2 = scmp.lt.s32.totalorder %s1825_s12, %s1825_s12 }
   0x5   :  { %p1832_p3 = por %p1831_p2, %p1830_p1 }
   0x7   :  { %p1833_p4 = pnand %p1832_p3, %p1826_p0 }
   0x9   :  { %1836 = shalt.err (!%p1833_p4)
}
   0xa   :  { %s1839_s13 = smov [#allocation2]  }
   0xb   :  { %17 = dma.vmem_to_smem %s15_s11, 64, %s1839_s13, [#allocation3]  }
   0xc   :  { %1837 = dma.done.wait [#allocation3], 64  }
   0xd   :  { %1838 = vsyncadd [#allocation3], 4294967232 }
   0xe   :  { %23 = sfence }
   0xf   :  { %s25_s14 = sld [smem:[#allocation2]]  ;;  %s1338_s15 = sld [smem:[#allocation2 + $0x3]]  ;;  %v1861_v0 = vld [vmem:[%s2437_s1] sm:$0xff]  ;;  %vm345_vm0 = vcmask 8192   ;;  %vm508_vm1 = vcmask 9217   ;;  %vm671_vm2 = vcmask 10242  }
  0x10   :  { %s1359_s16 = sld [smem:[#allocation2 + $0x8]]  ;;  %s1360_s17 = sld [smem:[#allocation2 + $0xc]]  ;;  %vm834_vm3 = vcmask 11267   ;;  %vm997_vm4 = vcmask 12292   ;;  %vm1160_vm5 = vcmask 13317   ;;  %vm1272_vm6 = vcmask 14342  }
  0x11   :  { %s1365_s0 = sld [smem:[#allocation2 + $0xb]]  ;;  %s1366_s20 = sld [smem:[#allocation2 + $0xf]]  ;;  %vm1329_vm7 = vcmask 15367  }
  0x12   :  { %s1337_s21 = sld [smem:[#allocation2 + $0x2]]  ;;  %s1364_s23 = sld [smem:[#allocation2 + $0xe]] }
  0x13   :  { %s1363_s22 = sld [smem:[#allocation2 + $0xa]]  ;;  %s1886_s26 = sld [smem:[#allocation2 + $0x1]] }
  0x14   :  { %s1339_s27 = sld [smem:[#allocation2 + $0x80]]  ;;  %s1342_s28 = sld [smem:[#allocation2 + $0x83]] }
  0x15   :  { %v26_v1 = vstv %s25_s14  ;;  %v32_v2 = vstv %s1338_s15  ;;  %s1347_s29 = sld [smem:[#allocation2 + $0x4]]  ;;  %s1367_s30 = sld [smem:[#allocation2 + $0x88]] }
  0x16   :  { %v1864_v3 = vmul.f32 %v26_v1, %v1861_v0  ;;  %s75_s24 = sadd.f32 %s1360_s17, %s1359_s16  ;;  %v1869_v5 = vmul.f32 %v32_v2, %v1861_v0  ;;  %s1368_s3 = sld [smem:[#allocation2 + $0x8c]] }
  0x17   :  { %s87_s25 = sadd.f32 %s1366_s20, %s1365_s0  ;;  %s1348_s4 = sld [smem:[#allocation2 + $0x5]] }
  0x18   :  { %v1866_v4 = vstv %s75_s24  ;;  %2445 = vst [vmem:[#allocation5_spill] sm:$0xff] %v1869_v5  ;;  %v30_v10 = vstv %s1337_s21  ;;  %s1350_s5 = sld [smem:[#allocation2 + $0x7]]  ;;  %s1889_s6 = sld [smem:[#allocation2 + $0x9]] }
  0x19   :  { %v122_v6 = vadd.f32 %v1864_v3, %v1866_v4  ;;  %v1873_v7 = vstv %s87_s25  ;;  %s83_s1 = sadd.f32 %s1364_s23, %s1363_s22  ;;  %v1878_v11 = vmul.f32 %v30_v10, %v1861_v0  ;;  %s1891_s7 = sld [smem:[#allocation2 + $0xd]]  ;;  %v28_v23 = vstv %s1886_s26 }
  0x1a   :  { %v133_v9 = vadd.f32 %v1869_v5, %v1873_v7  ;;  %s1893_s8 = sld [smem:[#allocation2 + $0x8b]]  ;;  %s1374_s9 = sld [smem:[#allocation2 + $0x8f]]  ;;  %v1904_v28 = vstv %s1339_s27  ;;  %v1910_v30 = vstv %s1342_s28  ;;  %v1916_v31 = vmul.f32 %v28_v23, %v1861_v0 }
  0x1b   :  { %v1383_v8 = vmul.f32 -1.442695, %v122_v6  ;;  %v1880_v13 = vstv %s83_s1  ;;  %s1349_s10 = sld [smem:[#allocation2 + $0x6]]  ;;  %s1896_s12 = sld [smem:[#allocation2 + $0x82]]  ;;  %v1898_v25 = vstv %s1347_s29 }
  0x1c   :  { %v1384_v12 = vmul.f32 -1.442695, %v133_v9  ;;  %v130_v14 = vadd.f32 %v1878_v11, %v1880_v13  ;;  %s91_s11 = sadd.f32 %s1368_s3, %s1367_s30  ;;  %s1908_s14 = sld [smem:[#allocation2 + $0x8a]] }
  0x1d   :  { %1453 = vpow2.f32 %v1383_v8  ;;  %v1900_v26 = vstv %s1348_s4  ;;  %s1912_s15 = sld [smem:[#allocation2 + $0x8e]]  ;;  %s1351_s18 = sld [smem:[#allocation2 + $0x84]] }
  0x1e   :  { %1455 = vpow2.f32 %v1384_v12  ;;  %v1902_v27 = vstv %s1350_s5  ;;  %v1918_v32 = vstv %s91_s11  ;;  %s1352_s19 = sld [smem:[#allocation2 + $0x85]]  ;;  %s1340_s0 = sld [smem:[#allocation2 + $0x81]] }
  0x1f   :  { %1457 = vtanh.f32 %v130_v14  ;;  %s79_s13 = sadd.f32 %s1891_s7, %s1889_s6  ;;  %s1353_s20 = sld [smem:[#allocation2 + $0x86]] }
  0x20   :  { %s103_s16 = sadd.f32 %s1374_s9, %s1893_s8  ;;  %s1354_s21 = sld [smem:[#allocation2 + $0x87]] }
  0x21   :  { %v1924_v37 = vstv %s1349_s10  ;;  %v1927_v41 = vstv %s79_s13  ;;  %v1939_v52 = vstv %s1896_s12  ;;  %s1958_s22 = sld [smem:[#allocation2 + $0x89]]  ;;  %s1370_s23 = sld [smem:[#allocation2 + $0x8d]] }
  0x22   :  { %v1929_v42 = vstv %s103_s16  ;;  %2446 = vst [vmem:[#allocation6_spill] sm:$0xff] %v1939_v52  ;;  %s1960_s24 = sld [smem:[#allocation2 + $0x108]]  ;;  %s1962_s25 = sld [smem:[#allocation2 + $0x10c]] }
  0x23   :  { %s99_s17 = sadd.f32 %s1912_s15, %s1908_s14  ;;  %s1343_s1 = sld [smem:[#allocation2 + $0x100]] }
  0x24   :  { %s1974_s26 = sld [smem:[#allocation2 + $0x103]]  ;;  %s1987_s30 = sld [smem:[#allocation2 + $0x10f]] }
  0x25   :  { %v1945_v59 = vstv %s99_s17  ;;  %s1979_s28 = sld [smem:[#allocation2 + $0x10b]]  ;;  %s2010_s3 = sld [smem:[#allocation2 + $0x102]] }
  0x26   :  { %s2012_s4 = sld [smem:[#allocation2 + $0x10a]]  ;;  %s2020_s5 = sld [smem:[#allocation2 + $0x10e]] }
  0x27   :  { %v1454_v15 = vpop.eup %1453  ;;  %s95_s27 = sadd.f32 %s1370_s23, %s1958_s22  ;;  %s1344_s8 = sld [smem:[#allocation2 + $0x101]] }
  0x28   :  { %v126_v16 = vadd.f32 1.0, %v1454_v15  ;;  %v1456_v17 = vpop.eup %1455  ;;  %s107_s29 = sadd.f32 %s1962_s25, %s1960_s24  ;;  %s1355_s9 = sld [smem:[#allocation2 + $0x104]] }
  0x29   :  { %v137_v18 = vadd.f32 1.0, %v1456_v17  ;;  %v1458_v19 = vpop.eup %1457  ;;  %s2059_s10 = sld [smem:[#allocation2 + $0x105]]  ;;  %s2061_s11 = sld [smem:[#allocation2 + $0x106]] }
  0x2a   :  { %1459 = vrcp.f32 %v126_v16  ;;  %s2072_s12 = sld [smem:[#allocation2 + $0x107]]  ;;  %s2078_s13 = sld [smem:[#allocation2 + $0x109]] }
  0x2b   :  { %1461 = vrcp.f32 %v137_v18  ;;  %s119_s6 = sadd.f32 %s1987_s30, %s1979_s28  ;;  %s2080_s14 = sld [smem:[#allocation2 + $0x10d]] }
  0x2c   :  { %s115_s7 = sadd.f32 %s2020_s5, %s2012_s4 }
  0x31   :  { %s111_s17 = sadd.f32 %s2080_s14, %s2078_s13 }
  0x34   :  { %v1460_v20 = vpop.eup %1459 }
  0x35   :  { %v1884_v21 = vmul.f32 %v1460_v20, %v1458_v19  ;;  %v1462_v22 = vpop.eup %1461 }
  0x37   :  { %1463 = vtanh.f32 %v1884_v21  ;;  %v188_v19 = vrot.slane %v1884_v21, 7 }
  0x41   :  { %v1464_v24 = vpop.eup %1463 }
  0x42   :  { %v142_v29 = vmul.f32 %v1464_v24, %v1462_v22 }
  0x44   :  { %v143_v33 = vmul.f32 %v142_v29, %v1898_v25  ;;  %v156_v34 = vmul.f32 %v142_v29, %v1900_v26  ;;  %v175_v35 = vmul.f32 %v142_v29, %v1902_v27  ;;  %v195_v36 = vmul.f32 %v142_v29, %v1904_v28 }
  0x45   :  { %v206_v40 = vmul.f32 %v142_v29, %v1910_v30  ;;  %v168_v47 = vmul.f32 %v142_v29, %v1924_v37  ;;  %v203_v57 = vmul.f32 %v142_v29, %v1939_v52 }
  0x46   :  { %v145_v38 = vrot.slane %v143_v33, 7  ;;  %v158_v39 = vrot.slane %v156_v34, 7  ;;  %v177_v43 = vrot.slane %v175_v35, 7  ;;  %v196_v44 = vadd.f32 %v195_v36, %v1918_v32 }
  0x47   :  { %v207_v51 = vadd.f32 %v206_v40, %v1929_v42  ;;  %v170_v56 = vrot.slane %v168_v47, 7  ;;  %v204_v62 = vadd.f32 %v203_v57, %v1945_v59  ;;  %v1964_v36 = vstv %s1351_s18 }
  0x48   :  { %v147_v45 = vadd.f32 %v145_v38, %v1864_v3  ;;  %v160_v46 = vadd.f32 %v158_v39, %v1916_v31  ;;  %v1388_v48 = vmul.f32 -1.442695, %v196_v44  ;;  %v179_v53 = vadd.f32 %v177_v43, %v1869_v5 }
  0x49   :  { %v1389_v58 = vmul.f32 -1.442695, %v207_v51  ;;  %v172_v61 = vadd.f32 %v170_v56, %v1878_v11  ;;  %v1966_v38 = vstv %s1352_s19  ;;  %v1981_v47 = vstv %s1340_s0 }
  0x4a   :  { %v148_v49 = vadd.f32 %v147_v45, %v1866_v4  ;;  %v161_v50 = vadd.f32 %v160_v46, %v1927_v41  ;;  %1465 = vpow2.f32 %v1388_v48  ;;  %v180_v60 = vadd.f32 %v179_v53, %v1873_v7 }
  0x4b   :  { %v173_v1 = vadd.f32 %v172_v61, %v1880_v13  ;;  %v1976_v46 = vstv %s1354_s21  ;;  %v1983_v48 = vstv %s1353_s20 }
  0x4c   :  { %v1385_v54 = vmul.f32 -1.442695, %v148_v49  ;;  %v1386_v55 = vmul.f32 -1.442695, %v161_v50  ;;  %v1387_v63 = vmul.f32 -1.442695, %v180_v60  ;;  %v1989_v50 = vstv %s1343_s1 }
  0x4d   :  { %2447 = vst [vmem:[#allocation7_spill] sm:$0xff] %v1976_v46 }
  0x4e   :  { %1467 = vpow2.f32 %v1385_v54 }
  0x4f   :  { %1469 = vpow2.f32 %v1386_v55 }
  0x50   :  { %1471 = vpow2.f32 %v1389_v58  ;;  %v1996_v58 = vstv %s95_s27 }
  0x51   :  { %1473 = vtanh.f32 %v204_v62 }
  0x52   :  { %1475 = vpow2.f32 %v1387_v63  ;;  %v2002_v63 = vstv %s107_s29 }
  0x54   :  { %v1466_v0 = vpop.eup %1465 }
  0x55   :  { %v200_v2 = vadd.f32 1.0, %v1466_v0 }
  0x57   :  { %1477 = vrcp.f32 %v200_v2 }
  0x58   :  { %v1468_v6 = vpop.eup %1467  ;;  %1479 = vtanh.f32 %v173_v1 }
  0x59   :  { %v1470_v8 = vpop.eup %1469  ;;  %v152_v9 = vadd.f32 1.0, %v1468_v6 }
  0x5a   :  { %v165_v10 = vadd.f32 1.0, %v1470_v8  ;;  %v1472_v12 = vpop.eup %1471 }
  0x5b   :  { %1481 = vrcp.f32 %v152_v9  ;;  %v211_v14 = vadd.f32 1.0, %v1472_v12  ;;  %v1474_v15 = vpop.eup %1473 }
  0x5c   :  { %1483 = vrcp.f32 %v165_v10  ;;  %v1476_v16 = vpop.eup %1475 }
  0x5d   :  { %1485 = vrcp.f32 %v211_v14  ;;  %v184_v23 = vadd.f32 1.0, %v1476_v16 }
  0x61   :  { %v1478_v17 = vpop.eup %1477 }
  0x62   :  { %v1480_v18 = vpop.eup %1479  ;;  %v1952_v20 = vmul.f32 %v1478_v17, %v1474_v15 }
  0x64   :  { %1487 = vtanh.f32 %v1952_v20 }
  0x65   :  { %v1482_v22 = vpop.eup %1481  ;;  %1489 = vrcp.f32 %v184_v23  ;;  %v2018_v23 = vstv %s1974_s26 }
  0x66   :  { %v1484_v24 = vpop.eup %1483  ;;  %v191_v29 = vmul.f32 %v1482_v22, %v1480_v18 }
  0x67   :  { %v190_v33 = vmul.f32 %v1484_v24, %v188_v19  ;;  %v1486_v21 = vpop.eup %1485 }
  0x69   :  { %v1955_v34 = vadd.f32 %v191_v29, %v190_v33 }
  0x6b   :  { %1491 = vtanh.f32 %v1955_v34 }
  0x6e   :  { %v1488_v35 = vpop.eup %1487 }
  0x6f   :  { %v1968_v39 = vmul.f32 %v1488_v35, %v1486_v21  ;;  %v1490_v40 = vpop.eup %1489 }
  0x71   :  { %v269_v43 = vmul.f32 %v1968_v39, %v1964_v36  ;;  %v282_v44 = vmul.f32 %v1968_v39, %v1966_v38  ;;  %v303_v57 = vmul.f32 %v1968_v39, %v1976_v46  ;;  %v295_v62 = vmul.f32 %v1968_v39, %v1983_v48 }
  0x72   :  { %v323_v10 = vmul.f32 %v1968_v39, %v1989_v50 }
  0x73   :  { %v271_v51 = vrot.slane %v269_v43, 7  ;;  %v284_v53 = vrot.slane %v282_v44, 7  ;;  %v305_v16 = vrot.slane %v303_v57, 7  ;;  %v297_v22 = vrot.slane %v295_v62, 7 }
  0x75   :  { %v1492_v45 = vpop.eup %1491 }
  0x76   :  { %v194_v49 = vmul.f32 %v1492_v45, %v1490_v40  ;;  %v324_v40 = vadd.f32 %v323_v10, %v2002_v63  ;;  %v2045_v10 = vstv %s115_s7 }
  0x78   :  { %v217_v54 = vmul.f32 %v194_v49, %v1898_v25  ;;  %v229_v55 = vmul.f32 %v194_v49, %v1900_v26  ;;  %v248_v56 = vmul.f32 %v194_v49, %v1902_v27  ;;  %v268_v60 = vmul.f32 %v194_v49, %v1904_v28 }
  0x79   :  { %v281_v61 = vmul.f32 %v194_v49, %v1981_v47  ;;  %v241_v2 = vmul.f32 %v194_v49, %v1924_v37  ;;  %v302_v15 = vmul.f32 %v194_v49, %v1910_v30  ;;  %v294_v19 = vmul.f32 %v194_v49, %v1939_v52 }
  0x7a   :  { %v219_v0 = vrot.slane %v217_v54, 7  ;;  %v231_v1 = vrot.slane %v229_v55, 7  ;;  %v250_v6 = vrot.slane %v248_v56, 7  ;;  %v273_v8 = vadd.f32 %v271_v51, %v268_v60 }
  0x7b   :  { %v286_v9 = vadd.f32 %v284_v53, %v281_v61  ;;  %v243_v33 = vrot.slane %v241_v2, 7  ;;  %v307_v45 = vadd.f32 %v305_v16, %v302_v15  ;;  %v299_v51 = vadd.f32 %v297_v22, %v294_v19 }
  0x7c   :  { %v221_v12 = vadd.f32 %v219_v0, %v1864_v3  ;;  %v233_v14 = vadd.f32 %v231_v1, %v1916_v31  ;;  %v274_v17 = vadd.f32 %v273_v8, %v1918_v32  ;;  %v252_v21 = vadd.f32 %v250_v6, %v1869_v5 }
  0x7d   :  { %v287_v18 = vadd.f32 %v286_v9, %v1996_v58  ;;  %v334_v53 = vmul.f32 %v1968_v39, %v2018_v23  ;;  %v2030_v54 = vstv %s119_s6  ;;  %v245_v55 = vadd.f32 %v243_v33, %v1878_v11 }
  0x7e   :  { %v222_v24 = vadd.f32 %v221_v12, %v1866_v4  ;;  %v234_v29 = vadd.f32 %v233_v14, %v1927_v41  ;;  %v1393_v35 = vmul.f32 -1.442695, %v274_v17  ;;  %v253_v56 = vadd.f32 %v252_v21, %v1873_v7 }
  0x7f   :  { %v1394_v49 = vmul.f32 -1.442695, %v287_v18  ;;  %v1396_v57 = vmul.f32 -1.442695, %v324_v40  ;;  %v308_v60 = vadd.f32 %v307_v45, %v1929_v42  ;;  %v300_v61 = vadd.f32 %v299_v51, %v1945_v59 }
  0x80   :  { %v1390_v43 = vmul.f32 -1.442695, %v222_v24  ;;  %v1391_v44 = vmul.f32 -1.442695, %v234_v29  ;;  %1493 = vpow2.f32 %v1393_v35  ;;  %v335_v62 = vadd.f32 %v334_v53, %v2030_v54 }
  0x81   :  { %v2038_v0 = vstv %s2010_s3  ;;  %v246_v1 = vadd.f32 %v245_v55, %v1880_v13  ;;  %v1392_v2 = vmul.f32 -1.442695, %v253_v56  ;;  %v1395_v6 = vmul.f32 -1.442695, %v308_v60 }
  0x82   :  { %1495 = vpow2.f32 %v1390_v43  ;;  %v331_v8 = vmul.f32 %v1968_v39, %v2038_v0  ;;  %v1397_v9 = vmul.f32 -1.442695, %v335_v62  ;;  %v316_v53 = vrot.slane %v1952_v20, 7 }
  0x83   :  { %1497 = vpow2.f32 %v1391_v44  ;;  %v261_v44 = vrot.slane %v1955_v34, 7 }
  0x84   :  { %1499 = vpow2.f32 %v1394_v49  ;;  %v332_v18 = vadd.f32 %v331_v8, %v2045_v10 }
  0x85   :  { %1501 = vpow2.f32 %v1396_v57 }
  0x86   :  { %1503 = vtanh.f32 %v300_v61 }
  0x87   :  { %1505 = vtanh.f32 %v246_v1 }
  0x88   :  { %1507 = vpow2.f32 %v1392_v2 }
  0x89   :  { %1509 = vpow2.f32 %v1395_v6 }
  0x8a   :  { %v1494_v12 = vpop.eup %1493  ;;  %1511 = vpow2.f32 %v1397_v9 }
  0x8b   :  { %v278_v15 = vadd.f32 1.0, %v1494_v12 }
  0x8c   :  { %v1496_v14 = vpop.eup %1495 }
  0x8d   :  { %v1498_v16 = vpop.eup %1497  ;;  %v226_v17 = vadd.f32 1.0, %v1496_v14  ;;  %1513 = vrcp.f32 %v278_v15 }
  0x8e   :  { %v238_v19 = vadd.f32 1.0, %v1498_v16  ;;  %v1500_v22 = vpop.eup %1499 }
  0x8f   :  { %1515 = vrcp.f32 %v226_v17  ;;  %v291_v39 = vadd.f32 1.0, %v1500_v22  ;;  %v1502_v24 = vpop.eup %1501 }
  0x90   :  { %1517 = vrcp.f32 %v238_v19  ;;  %v328_v29 = vadd.f32 1.0, %v1502_v24  ;;  %v1504_v33 = vpop.eup %1503 }
  0x91   :  { %1519 = vtanh.f32 %v332_v18  ;;  %v1506_v21 = vpop.eup %1505 }
  0x92   :  { %1521 = vrcp.f32 %v291_v39  ;;  %v1508_v35 = vpop.eup %1507 }
  0x93   :  { %1523 = vrcp.f32 %v328_v29  ;;  %v1510_v40 = vpop.eup %1509  ;;  %v257_v51 = vadd.f32 1.0, %v1508_v35 }
  0x94   :  { %v1512_v43 = vpop.eup %1511  ;;  %v312_v57 = vadd.f32 1.0, %v1510_v40 }
  0x95   :  { %v339_v2 = vadd.f32 1.0, %v1512_v43  ;;  %1525 = vrcp.f32 %v257_v51 }
  0x96   :  { %1527 = vrcp.f32 %v312_v57 }
  0x97   :  { %v1514_v45 = vpop.eup %1513 }
  0x98   :  { %v319_v62 = vmul.f32 %v1514_v45, %v1504_v33  ;;  %v2068_v33 = vstv %s1344_s8 }
  0x99   :  { %v1516_v49 = vpop.eup %1515 }
  0x9a   :  { %v1518_v55 = vpop.eup %1517  ;;  %v264_v56 = vmul.f32 %v1516_v49, %v1506_v21  ;;  %v2070_v21 = vstv %s1355_s9 }
  0x9b   :  { %v1520_v60 = vpop.eup %1519  ;;  %v263_v61 = vmul.f32 %v1518_v55, %v261_v44 }
  0x9c   :  { %v1522_v1 = vpop.eup %1521 }
  0x9d   :  { %v2050_v6 = vadd.f32 %v264_v56, %v263_v61  ;;  %v318_v8 = vmul.f32 %v1522_v1, %v316_v53  ;;  %v1524_v9 = vpop.eup %1523  ;;  %v2094_v1 = vstv %s2059_s10 }
  0x9e   :  { %v2055_v12 = vmul.f32 %v1524_v9, %v1520_v60 }
  0x9f   :  { %1529 = vtanh.f32 %v2050_v6  ;;  %v2053_v34 = vadd.f32 %v319_v62, %v318_v8  ;;  %v1526_v20 = vpop.eup %1525 }
  0xa0   :  { %1531 = vrcp.f32 %v339_v2  ;;  %v1528_v14 = vpop.eup %1527  ;;  %v2097_v2 = vstv %s2061_s11 }
  0xa1   :  { %1533 = vtanh.f32 %v2053_v34 }
  0xa2   :  { %1535 = vtanh.f32 %v2055_v12 }
  0xa9   :  { %v1530_v15 = vpop.eup %1529 }
  0xaa   :  { %v1532_v16 = vpop.eup %1531  ;;  %v267_v17 = vmul.f32 %v1530_v15, %v1526_v20 }
  0xab   :  { %v1534_v18 = vpop.eup %1533 }
  0xac   :  { %v1536_v19 = vpop.eup %1535  ;;  %v2063_v22 = vmul.f32 %v1534_v18, %v1528_v14  ;;  %v347_v39 = vmul.f32 %v267_v17, %v1898_v25  ;;  %v359_v24 = vmul.f32 %v267_v17, %v1900_v26  ;;  %v371_v29 = vmul.f32 %v267_v17, %v1924_v37 }
  0xad   :  { %v344_v35 = vmul.f32 %v1536_v19, %v1532_v16  ;;  %v378_v40 = vmul.f32 %v267_v17, %v1902_v27  ;;  %v398_v45 = vmul.f32 %v267_v17, %v1904_v28  ;;  %v411_v53 = vmul.f32 %v267_v17, %v1981_v47 }
  0xae   :  { %v349_v43 = vrot.slane %v347_v39, 7  ;;  %v361_v44 = vrot.slane %v359_v24, 7  ;;  %v399_v49 = vmul.f32 %v2063_v22, %v1964_v36  ;;  %v412_v55 = vmul.f32 %v2063_v22, %v1966_v38 }
  0xaf   :  { %346 = vst.msk [vmem:[%s2438_s2] sm:$0x1] %vm345_vm0, %v344_v35  ;;  %v380_v51 = vrot.slane %v378_v40, 7  ;;  %v425_v56 = vmul.f32 %v2063_v22, %v1983_v48  ;;  %v373_v61 = vrot.slane %v371_v29, 7  ;;  %v424_v16 = vmul.f32 %v267_v17, %v1939_v52 }
  0xb0   :  { %v351_v57 = vadd.f32 %v349_v43, %v1864_v3  ;;  %v363_v60 = vadd.f32 %v361_v44, %v1916_v31  ;;  %v401_v62 = vrot.slane %v399_v49, 7  ;;  %v414_v9 = vrot.slane %v412_v55, 7 }
  0xb1   :  { %v382_v8 = vadd.f32 %v380_v51, %v1869_v5  ;;  %v427_v19 = vrot.slane %v425_v56, 7  ;;  %v432_v39 = vmul.f32 %v267_v17, %v1910_v30  ;;  %v433_v24 = vmul.f32 %v2063_v22, %v1976_v46 }
  0xb2   :  { %v352_v20 = vadd.f32 %v351_v57, %v1866_v4  ;;  %v364_v14 = vadd.f32 %v363_v60, %v1927_v41  ;;  %v403_v15 = vadd.f32 %v401_v62, %v398_v45  ;;  %v416_v18 = vadd.f32 %v414_v9, %v411_v53 }
  0xb3   :  { %v375_v43 = vadd.f32 %v373_v61, %v1878_v11  ;;  %v2109_v49 = vstv %s2072_s12  ;;  %v383_v45 = vadd.f32 %v382_v8, %v1873_v7  ;;  %v435_v53 = vrot.slane %v433_v24, 7 }
  0xb4   :  { %v1398_v29 = vmul.f32 -1.442695, %v352_v20  ;;  %v1399_v40 = vmul.f32 -1.442695, %v364_v14  ;;  %v404_v44 = vadd.f32 %v403_v15, %v1918_v32  ;;  %v417_v51 = vadd.f32 %v416_v18, %v1996_v58 }
  0xb5   :  { %v453_v17 = vmul.f32 %v2063_v22, %v1989_v50  ;;  %v454_v56 = vmul.f32 %v344_v35, %v2070_v21  ;;  %v429_v60 = vadd.f32 %v427_v19, %v424_v16  ;;  %v437_v61 = vadd.f32 %v435_v53, %v432_v39 }
  0xb6   :  { %1537 = vpow2.f32 %v1398_v29  ;;  %v1401_v55 = vmul.f32 -1.442695, %v404_v44  ;;  %v1402_v57 = vmul.f32 -1.442695, %v417_v51  ;;  %v376_v62 = vadd.f32 %v375_v43, %v1880_v13 }
  0xb7   :  { %1539 = vpow2.f32 %v1399_v40  ;;  %v456_v9 = vrot.slane %v454_v56, 7  ;;  %v466_v8 = vmul.f32 %v2063_v22, %v2068_v33  ;;  %v467_v20 = vmul.f32 %v344_v35, %v2094_v1 }
  0xb8   :  { %v1400_v14 = vmul.f32 -1.442695, %v383_v45  ;;  %1541 = vpow2.f32 %v1401_v55  ;;  %v438_v15 = vadd.f32 %v437_v61, %v1929_v42  ;;  %v480_v18 = vmul.f32 %v344_v35, %v2097_v2 }
  0xb9   :  { %1543 = vpow2.f32 %v1402_v57  ;;  %v458_v24 = vadd.f32 %v456_v9, %v453_v17  ;;  %v469_v29 = vrot.slane %v467_v20, 7  ;;  %v488_v16 = vmul.f32 %v344_v35, %v2109_v49 }
  0xba   :  { %v2125_v19 = vstv %s111_s17  ;;  %v430_v39 = vadd.f32 %v429_v60, %v1945_v59  ;;  %v487_v40 = vmul.f32 %v2063_v22, %v2018_v23  ;;  %1545 = vtanh.f32 %v376_v62 }
  0xbb   :  { %v459_v43 = vadd.f32 %v458_v24, %v2002_v63  ;;  %v471_v44 = vadd.f32 %v469_v29, %v466_v8  ;;  %v490_v45 = vrot.slane %v488_v16, 7  ;;  %1547 = vpow2.f32 %v1400_v14 }
  0xbc   :  { %v1403_v51 = vmul.f32 -1.442695, %v438_v15  ;;  %v479_v35 = vmul.f32 %v2063_v22, %v2038_v0  ;;  %v482_v17 = vrot.slane %v480_v18, 7  ;;  %1549 = vtanh.f32 %v430_v39 }
  0xbd   :  { %v1404_v53 = vmul.f32 -1.442695, %v459_v43  ;;  %v472_v55 = vadd.f32 %v471_v44, %v2125_v19  ;;  %v492_v56 = vadd.f32 %v490_v45, %v487_v40  ;;  %v391_v45 = vrot.slane %v2050_v6, 7 }
  0xbe   :  { %v484_v8 = vadd.f32 %v482_v17, %v479_v35 }
  0xbf   :  { %1551 = vpow2.f32 %v1404_v53  ;;  %v1405_v60 = vmul.f32 -1.442695, %v472_v55  ;;  %v493_v14 = vadd.f32 %v492_v56, %v2030_v54 }
  0xc0   :  { %v1538_v57 = vpop.eup %1537  ;;  %1553 = vpow2.f32 %v1403_v51  ;;  %v485_v29 = vadd.f32 %v484_v8, %v2045_v10 }
  0xc1   :  { %v1540_v61 = vpop.eup %1539  ;;  %v356_v62 = vadd.f32 1.0, %v1538_v57  ;;  %1555 = vpow2.f32 %v1405_v60  ;;  %v1406_v39 = vmul.f32 -1.442695, %v493_v14  ;;  %v446_v60 = vrot.slane %v2053_v34, 7 }
  0xc2   :  { %v368_v9 = vadd.f32 1.0, %v1540_v61  ;;  %v1542_v20 = vpop.eup %1541  ;;  %v501_v34 = vrot.slane %v2055_v12, 7 }
  0xc3   :  { %1557 = vrcp.f32 %v356_v62  ;;  %v1544_v15 = vpop.eup %1543  ;;  %v408_v24 = vadd.f32 1.0, %v1542_v20 }
  0xc4   :  { %1559 = vrcp.f32 %v368_v9  ;;  %v421_v22 = vadd.f32 1.0, %v1544_v15  ;;  %v1546_v18 = vpop.eup %1545 }
  0xc5   :  { %1561 = vrcp.f32 %v408_v24  ;;  %v1548_v16 = vpop.eup %1547 }
  0xc6   :  { %1563 = vrcp.f32 %v421_v22  ;;  %v1550_v40 = vpop.eup %1549  ;;  %v387_v35 = vadd.f32 1.0, %v1548_v16 }
  0xc7   :  { %1565 = vtanh.f32 %v485_v29 }
  0xc8   :  { %1567 = vpow2.f32 %v1406_v39 }
  0xc9   :  { %v1552_v43 = vpop.eup %1551 }
  0xca   :  { %v1554_v44 = vpop.eup %1553  ;;  %v463_v51 = vadd.f32 1.0, %v1552_v43 }
  0xcb   :  { %v1556_v53 = vpop.eup %1555  ;;  %v442_v9 = vadd.f32 1.0, %v1554_v44 }
  0xcc   :  { %1569 = vrcp.f32 %v463_v51  ;;  %v476_v17 = vadd.f32 1.0, %v1556_v53 }
  0xcd   :  { %v1558_v55 = vpop.eup %1557 }
  0xce   :  { %v1560_v56 = vpop.eup %1559  ;;  %v394_v57 = vmul.f32 %v1558_v55, %v1546_v18  ;;  %1571 = vrcp.f32 %v476_v17 }
  0xcf   :  { %v393_v61 = vmul.f32 %v1560_v56, %v391_v45  ;;  %v1562_v62 = vpop.eup %1561  ;;  %1573 = vrcp.f32 %v387_v35 }
  0xd0   :  { %v1564_v8 = vpop.eup %1563  ;;  %v449_v6 = vmul.f32 %v1562_v62, %v1550_v40 }
  0xd1   :  { %v2138_v20 = vadd.f32 %v394_v57, %v393_v61  ;;  %v448_v14 = vmul.f32 %v1564_v8, %v446_v60  ;;  %v1566_v15 = vpop.eup %1565 }
  0xd2   :  { %v1568_v22 = vpop.eup %1567 }
  0xd3   :  { %1575 = vtanh.f32 %v2138_v20  ;;  %v2141_v24 = vadd.f32 %v449_v6, %v448_v14  ;;  %v497_v29 = vadd.f32 1.0, %v1568_v22 }
  0xd4   :  { %1577 = vrcp.f32 %v442_v9 }
  0xd5   :  { %1579 = vtanh.f32 %v2141_v24 }
  0xd6   :  { %v1570_v18 = vpop.eup %1569  ;;  %1581 = vrcp.f32 %v497_v29 }
  0xd7   :  { %v504_v16 = vmul.f32 %v1570_v18, %v1566_v15 }
  0xd8   :  { %v1572_v39 = vpop.eup %1571 }
  0xd9   :  { %v503_v43 = vmul.f32 %v1572_v39, %v501_v34  ;;  %v1574_v44 = vpop.eup %1573 }
  0xdb   :  { %v2145_v40 = vadd.f32 %v504_v16, %v503_v43 }
  0xdd   :  { %v1576_v45 = vpop.eup %1575  ;;  %1583 = vtanh.f32 %v2145_v40 }
  0xde   :  { %v1578_v51 = vpop.eup %1577  ;;  %v397_v53 = vmul.f32 %v1576_v45, %v1574_v44 }
  0xdf   :  { %v1580_v55 = vpop.eup %1579 }
  0xe0   :  { %v510_v35 = vmul.f32 %v397_v53, %v1898_v25  ;;  %v522_v17 = vmul.f32 %v397_v53, %v1900_v26  ;;  %v534_v12 = vmul.f32 %v397_v53, %v1924_v37  ;;  %v541_v56 = vmul.f32 %v397_v53, %v1902_v27  ;;  %v1582_v45 = vpop.eup %1581 }
  0xe1   :  { %v2152_v57 = vmul.f32 %v1580_v55, %v1578_v51  ;;  %v561_v9 = vmul.f32 %v397_v53, %v1904_v28  ;;  %v574_v6 = vmul.f32 %v397_v53, %v1981_v47  ;;  %v587_v29 = vmul.f32 %v397_v53, %v1939_v52 }
  0xe2   :  { %v512_v60 = vrot.slane %v510_v35, 7  ;;  %v524_v61 = vrot.slane %v522_v17, 7  ;;  %v543_v62 = vrot.slane %v541_v56, 7  ;;  %v536_v18 = vrot.slane %v534_v12, 7 }
  0xe3   :  { %v562_v8 = vmul.f32 %v2152_v57, %v1964_v36  ;;  %v575_v14 = vmul.f32 %v2152_v57, %v1966_v38  ;;  %v588_v15 = vmul.f32 %v2152_v57, %v1983_v48  ;;  %v596_v44 = vmul.f32 %v2152_v57, %v1976_v46 }
  0xe4   :  { %v514_v22 = vadd.f32 %v512_v60, %v1864_v3  ;;  %v526_v34 = vadd.f32 %v524_v61, %v1916_v31  ;;  %v545_v16 = vadd.f32 %v543_v62, %v1869_v5  ;;  %v595_v17 = vmul.f32 %v397_v53, %v1910_v30 }
  0xe5   :  { %v564_v39 = vrot.slane %v562_v8, 7  ;;  %v577_v43 = vrot.slane %v575_v14, 7  ;;  %v590_v35 = vrot.slane %v588_v15, 7  ;;  %v598_v12 = vrot.slane %v596_v44, 7 }
  0xe6   :  { %v515_v51 = vadd.f32 %v514_v22, %v1866_v4  ;;  %v527_v55 = vadd.f32 %v526_v34, %v1927_v41  ;;  %v538_v8 = vadd.f32 %v536_v18, %v1878_v11  ;;  %v546_v46 = vadd.f32 %v545_v16, %v1873_v7 }
  0xe7   :  { %v566_v56 = vadd.f32 %v564_v39, %v561_v9  ;;  %v579_v60 = vadd.f32 %v577_v43, %v574_v6  ;;  %v1584_v61 = vpop.eup %1583  ;;  %v592_v15 = vadd.f32 %v590_v35, %v587_v29  ;;  %v600_v34 = vadd.f32 %v598_v12, %v595_v17 }
  0xe8   :  { %v1407_v52 = vmul.f32 -1.442695, %v515_v51  ;;  %v1408_v62 = vmul.f32 -1.442695, %v527_v55  ;;  %v507_v14 = vmul.f32 %v1584_v61, %v1582_v45  ;;  %v616_v53 = vmul.f32 %v2152_v57, %v1989_v50 }
  0xe9   :  { %v567_v5 = vadd.f32 %v566_v56, %v1918_v32  ;;  %v580_v22 = vadd.f32 %v579_v60, %v1996_v58  ;;  %v601_v16 = vadd.f32 %v600_v34, %v1929_v42  ;;  %v629_v39 = vmul.f32 %v2152_v57, %v2068_v33 }
  0xea   :  { %1585 = vpow2.f32 %v1407_v52  ;;  %509 = vst.msk [vmem:[%s2438_s2] sm:$0x2] %vm508_vm1, %v507_v14  ;;  %v617_v18 = vmul.f32 %v507_v14, %v2070_v21  ;;  %v630_v52 = vmul.f32 %v507_v14, %v2094_v1  ;;  %v539_v29 = vadd.f32 %v538_v8, %v1880_v13 }
  0xeb   :  { %1587 = vpow2.f32 %v1408_v62  ;;  %v1410_v9 = vmul.f32 -1.442695, %v567_v5  ;;  %v1411_v6 = vmul.f32 -1.442695, %v580_v22  ;;  %v1409_v44 = vmul.f32 -1.442695, %v546_v46 }
  0xec   :  { %v619_v43 = vrot.slane %v617_v18, 7  ;;  %v632_v45 = vrot.slane %v630_v52, 7  ;;  %v651_v51 = vmul.f32 %v507_v14, %v2109_v49  ;;  %v593_v5 = vadd.f32 %v592_v15, %v1945_v59 }
  0xed   :  { %1589 = vpow2.f32 %v1410_v9  ;;  %v650_v35 = vmul.f32 %v2152_v57, %v2018_v23  ;;  %v1412_v17 = vmul.f32 -1.442695, %v601_v16  ;;  %v643_v60 = vmul.f32 %v507_v14, %v2097_v2 }
  0xee   :  { %1591 = vpow2.f32 %v1411_v6  ;;  %v621_v55 = vadd.f32 %v619_v43, %v616_v53  ;;  %v634_v56 = vadd.f32 %v632_v45, %v629_v39  ;;  %v653_v12 = vrot.slane %v651_v51, 7 }
  0xef   :  { %1593 = vtanh.f32 %v539_v29  ;;  %v642_v34 = vmul.f32 %v2152_v57, %v2038_v0  ;;  %v645_v53 = vrot.slane %v643_v60, 7 }
  0xf0   :  { %v622_v61 = vadd.f32 %v621_v55, %v2002_v63  ;;  %1595 = vpow2.f32 %v1409_v44  ;;  %v635_v46 = vadd.f32 %v634_v56, %v2125_v19  ;;  %v655_v8 = vadd.f32 %v653_v12, %v650_v35 }
  0xf1   :  { %1597 = vtanh.f32 %v593_v5  ;;  %v647_v29 = vadd.f32 %v645_v53, %v642_v34 }
  0xf2   :  { %v1413_v62 = vmul.f32 -1.442695, %v622_v61  ;;  %1599 = vpow2.f32 %v1412_v17  ;;  %v1414_v15 = vmul.f32 -1.442695, %v635_v46  ;;  %v656_v16 = vadd.f32 %v655_v8, %v2030_v54 }
  0xf3   :  { %v648_v51 = vadd.f32 %v647_v29, %v2045_v10  ;;  %v554_v17 = vrot.slane %v2138_v20, 7 }
  0xf4   :  { %v1586_v22 = vpop.eup %1585  ;;  %1601 = vpow2.f32 %v1413_v62  ;;  %v1415_v45 = vmul.f32 -1.442695, %v656_v16 }
  0xf5   :  { %v1588_v9 = vpop.eup %1587  ;;  %v519_v6 = vadd.f32 1.0, %v1586_v22  ;;  %1603 = vpow2.f32 %v1414_v15  ;;  %v609_v22 = vrot.slane %v2141_v24, 7  ;;  %v664_v24 = vrot.slane %v2145_v40, 7 }
  0xf6   :  { %v531_v14 = vadd.f32 1.0, %v1588_v9 }
  0xf7   :  { %v1590_v18 = vpop.eup %1589  ;;  %1605 = vrcp.f32 %v519_v6 }
  0xf8   :  { %v1592_v39 = vpop.eup %1591  ;;  %1607 = vrcp.f32 %v531_v14  ;;  %v571_v52 = vadd.f32 1.0, %v1590_v18 }
  0xf9   :  { %v584_v43 = vadd.f32 1.0, %v1592_v39  ;;  %v1594_v44 = vpop.eup %1593 }
  0xfa   :  { %1609 = vrcp.f32 %v571_v52  ;;  %v1596_v57 = vpop.eup %1595 }
  0xfb   :  { %1611 = vrcp.f32 %v584_v43  ;;  %v1598_v5 = vpop.eup %1597  ;;  %v550_v61 = vadd.f32 1.0, %v1596_v57 }
  0xfc   :  { %v1600_v55 = vpop.eup %1599  ;;  %1613 = vpow2.f32 %v1415_v45 }
  0xfd   :  { %1615 = vtanh.f32 %v648_v51  ;;  %v605_v53 = vadd.f32 1.0, %v1600_v55 }
  0xfe   :  { %v1602_v35 = vpop.eup %1601 }
  0xff   :  { %v1604_v56 = vpop.eup %1603  ;;  %v626_v60 = vadd.f32 1.0, %v1602_v35 }
 0x100   :  { %v639_v46 = vadd.f32 1.0, %v1604_v56 }
 0x101   :  { %v1606_v12 = vpop.eup %1605  ;;  %1617 = vrcp.f32 %v626_v60 }
 0x102   :  { %v1608_v62 = vpop.eup %1607  ;;  %v557_v8 = vmul.f32 %v1606_v12, %v1594_v44  ;;  %1619 = vrcp.f32 %v639_v46 }
 0x103   :  { %v556_v15 = vmul.f32 %v1608_v62, %v554_v17  ;;  %1621 = vrcp.f32 %v550_v61 }
 0x104   :  { %v1610_v34 = vpop.eup %1609 }
 0x105   :  { %v1612_v9 = vpop.eup %1611  ;;  %v2199_v6 = vadd.f32 %v557_v8, %v556_v15  ;;  %v612_v20 = vmul.f32 %v1610_v34, %v1598_v5 }
 0x106   :  { %v611_v14 = vmul.f32 %v1612_v9, %v609_v22  ;;  %v1614_v16 = vpop.eup %1613 }
 0x107   :  { %1623 = vtanh.f32 %v2199_v6  ;;  %v1616_v39 = vpop.eup %1615  ;;  %v660_v29 = vadd.f32 1.0, %v1614_v16 }
 0x108   :  { %1625 = vrcp.f32 %v605_v53  ;;  %v2202_v18 = vadd.f32 %v612_v20, %v611_v14 }
 0x10a   :  { %1627 = vtanh.f32 %v2202_v18 }
 0x10b   :  { %v1618_v52 = vpop.eup %1617  ;;  %1629 = vrcp.f32 %v660_v29 }
 0x10c   :  { %v1620_v43 = vpop.eup %1619  ;;  %v667_v44 = vmul.f32 %v1618_v52, %v1616_v39  ;;  %v2448_v39 = vld [vmem:[#allocation6_spill] sm:$0xff]  ;;  %v2449_v52 = vld [vmem:[#allocation5_spill] sm:$0xff] }
 0x10d   :  { %v666_v45 = vmul.f32 %v1620_v43, %v664_v24  ;;  %v1622_v57 = vpop.eup %1621 }
 0x10f   :  { %v2206_v51 = vadd.f32 %v667_v44, %v666_v45  ;;  %v2450_v45 = vld [vmem:[#allocation7_spill] sm:$0xff] }
 0x111   :  { %v1624_v5 = vpop.eup %1623  ;;  %1631 = vtanh.f32 %v2206_v51 }
 0x112   :  { %v1626_v55 = vpop.eup %1625  ;;  %v560_v35 = vmul.f32 %v1624_v5, %v1622_v57 }
 0x114   :  { %v1628_v17 = vpop.eup %1627  ;;  %v673_v56 = vmul.f32 %v560_v35, %v1898_v25  ;;  %v685_v60 = vmul.f32 %v560_v35, %v1900_v26  ;;  %v697_v40 = vmul.f32 %v560_v35, %v1924_v37  ;;  %v704_v12 = vmul.f32 %v560_v35, %v1902_v27 }
 0x115   :  { %v2213_v61 = vmul.f32 %v1628_v17, %v1626_v55  ;;  %v724_v22 = vmul.f32 %v560_v35, %v1904_v28  ;;  %v737_v34 = vmul.f32 %v560_v35, %v1981_v47  ;;  %v750_v24 = vmul.f32 %v560_v35, %v2448_v39  ;;  %v1630_v5 = vpop.eup %1629 }
 0x116   :  { %v675_v46 = vrot.slane %v673_v56, 7  ;;  %v687_v62 = vrot.slane %v685_v60, 7  ;;  %v706_v8 = vrot.slane %v704_v12, 7  ;;  %v699_v16 = vrot.slane %v697_v40, 7 }
 0x117   :  { %v725_v15 = vmul.f32 %v2213_v61, %v1964_v36  ;;  %v738_v53 = vmul.f32 %v2213_v61, %v1966_v38  ;;  %v751_v9 = vmul.f32 %v2213_v61, %v1983_v48  ;;  %v759_v57 = vmul.f32 %v2213_v61, %v2450_v45 }
 0x118   :  { %v677_v20 = vadd.f32 %v675_v46, %v1864_v3  ;;  %v689_v14 = vadd.f32 %v687_v62, %v1916_v31  ;;  %v708_v29 = vadd.f32 %v706_v8, %v2449_v52  ;;  %v758_v60 = vmul.f32 %v560_v35, %v1910_v30 }
 0x119   :  { %v727_v43 = vrot.slane %v725_v15, 7  ;;  %v740_v44 = vrot.slane %v738_v53, 7  ;;  %v753_v56 = vrot.slane %v751_v9, 7  ;;  %v761_v40 = vrot.slane %v759_v57, 7 }
 0x11a   :  { %v678_v55 = vadd.f32 %v677_v20, %v1866_v4  ;;  %v690_v17 = vadd.f32 %v689_v14, %v1927_v41  ;;  %v701_v15 = vadd.f32 %v699_v16, %v1878_v11  ;;  %v709_v45 = vadd.f32 %v708_v29, %v1873_v7 }
 0x11b   :  { %v729_v12 = vadd.f32 %v727_v43, %v724_v22  ;;  %v742_v46 = vadd.f32 %v740_v44, %v737_v34  ;;  %v1632_v62 = vpop.eup %1631  ;;  %v755_v9 = vadd.f32 %v753_v56, %v750_v24  ;;  %v763_v14 = vadd.f32 %v761_v40, %v758_v60 }
 0x11c   :  { %v1416_v39 = vmul.f32 -1.442695, %v678_v55  ;;  %v1417_v8 = vmul.f32 -1.442695, %v690_v17  ;;  %v670_v53 = vmul.f32 %v1632_v62, %v1630_v5  ;;  %v779_v35 = vmul.f32 %v2213_v61, %v1989_v50 }
 0x11d   :  { %v730_v52 = vadd.f32 %v729_v12, %v1918_v32  ;;  %v743_v20 = vadd.f32 %v742_v46, %v1996_v58  ;;  %v764_v29 = vadd.f32 %v763_v14, %v1929_v42  ;;  %v792_v43 = vmul.f32 %v2213_v61, %v2068_v33 }
 0x11e   :  { %1633 = vpow2.f32 %v1416_v39  ;;  %672 = vst.msk [vmem:[%s2438_s2] sm:$0x4] %vm671_vm2, %v670_v53  ;;  %v780_v16 = vmul.f32 %v670_v53, %v2070_v21  ;;  %v793_v39 = vmul.f32 %v670_v53, %v2094_v1  ;;  %v702_v24 = vadd.f32 %v701_v15, %v1880_v13 }
 0x11f   :  { %1635 = vpow2.f32 %v1417_v8  ;;  %v1419_v22 = vmul.f32 -1.442695, %v730_v52  ;;  %v1420_v34 = vmul.f32 -1.442695, %v743_v20  ;;  %v1418_v57 = vmul.f32 -1.442695, %v709_v45 }
 0x120   :  { %v782_v44 = vrot.slane %v780_v16, 7  ;;  %v795_v5 = vrot.slane %v793_v39, 7  ;;  %v814_v55 = vmul.f32 %v670_v53, %v2109_v49  ;;  %v756_v52 = vadd.f32 %v755_v9, %v1945_v59 }
 0x121   :  { %1637 = vpow2.f32 %v1419_v22  ;;  %v813_v56 = vmul.f32 %v2213_v61, %v2018_v23  ;;  %v1421_v60 = vmul.f32 -1.442695, %v764_v29  ;;  %v806_v46 = vmul.f32 %v670_v53, %v2097_v2 }
 0x122   :  { %1639 = vpow2.f32 %v1420_v34  ;;  %v784_v17 = vadd.f32 %v782_v44, %v779_v35  ;;  %v797_v12 = vadd.f32 %v795_v5, %v792_v43  ;;  %v816_v40 = vrot.slane %v814_v55, 7 }
 0x123   :  { %1641 = vtanh.f32 %v702_v24  ;;  %v805_v14 = vmul.f32 %v2213_v61, %v2038_v0  ;;  %v808_v35 = vrot.slane %v806_v46, 7 }
 0x124   :  { %v785_v62 = vadd.f32 %v784_v17, %v2002_v63  ;;  %1643 = vpow2.f32 %v1418_v57  ;;  %v798_v45 = vadd.f32 %v797_v12, %v2125_v19  ;;  %v818_v15 = vadd.f32 %v816_v40, %v813_v56 }
 0x125   :  { %1645 = vtanh.f32 %v756_v52  ;;  %v810_v24 = vadd.f32 %v808_v35, %v805_v14 }
 0x126   :  { %v1422_v8 = vmul.f32 -1.442695, %v785_v62  ;;  %1647 = vpow2.f32 %v1421_v60  ;;  %v1423_v9 = vmul.f32 -1.442695, %v798_v45  ;;  %v819_v29 = vadd.f32 %v818_v15, %v2030_v54 }
 0x127   :  { %v811_v55 = vadd.f32 %v810_v24, %v2045_v10  ;;  %v717_v60 = vrot.slane %v2199_v6, 7 }
 0x128   :  { %v1634_v20 = vpop.eup %1633  ;;  %1649 = vpow2.f32 %v1422_v8  ;;  %v1424_v5 = vmul.f32 -1.442695, %v819_v29 }
 0x129   :  { %v1636_v22 = vpop.eup %1635  ;;  %v682_v34 = vadd.f32 1.0, %v1634_v20  ;;  %1651 = vpow2.f32 %v1423_v9  ;;  %v772_v20 = vrot.slane %v2202_v18, 7  ;;  %v827_v18 = vrot.slane %v2206_v51, 7 }
 0x12a   :  { %v694_v53 = vadd.f32 1.0, %v1636_v22 }
 0x12b   :  { %v1638_v16 = vpop.eup %1637  ;;  %1653 = vrcp.f32 %v682_v34 }
 0x12c   :  { %v1640_v43 = vpop.eup %1639  ;;  %1655 = vrcp.f32 %v694_v53  ;;  %v734_v39 = vadd.f32 1.0, %v1638_v16 }
 0x12d   :  { %v747_v44 = vadd.f32 1.0, %v1640_v43  ;;  %v1642_v57 = vpop.eup %1641 }
 0x12e   :  { %1657 = vrcp.f32 %v734_v39  ;;  %v1644_v61 = vpop.eup %1643 }
 0x12f   :  { %1659 = vrcp.f32 %v747_v44  ;;  %v1646_v52 = vpop.eup %1645  ;;  %v713_v62 = vadd.f32 1.0, %v1644_v61 }
 0x130   :  { %v1648_v17 = vpop.eup %1647  ;;  %1661 = vpow2.f32 %v1424_v5 }
 0x131   :  { %1663 = vtanh.f32 %v811_v55  ;;  %v768_v35 = vadd.f32 1.0, %v1648_v17 }
 0x132   :  { %v1650_v56 = vpop.eup %1649 }
 0x133   :  { %v1652_v12 = vpop.eup %1651  ;;  %v789_v46 = vadd.f32 1.0, %v1650_v56 }
 0x134   :  { %v802_v45 = vadd.f32 1.0, %v1652_v12 }
 0x135   :  { %v1654_v40 = vpop.eup %1653  ;;  %1665 = vrcp.f32 %v789_v46 }
 0x136   :  { %v1656_v8 = vpop.eup %1655  ;;  %v720_v15 = vmul.f32 %v1654_v40, %v1642_v57  ;;  %1667 = vrcp.f32 %v802_v45 }
 0x137   :  { %v719_v9 = vmul.f32 %v1656_v8, %v717_v60  ;;  %1669 = vrcp.f32 %v713_v62 }
 0x138   :  { %v1658_v14 = vpop.eup %1657 }
 0x139   :  { %v1660_v22 = vpop.eup %1659  ;;  %v2260_v34 = vadd.f32 %v720_v15, %v719_v9  ;;  %v775_v6 = vmul.f32 %v1658_v14, %v1646_v52 }
 0x13a   :  { %v774_v53 = vmul.f32 %v1660_v22, %v772_v20  ;;  %v1662_v29 = vpop.eup %1661 }
 0x13b   :  { %1671 = vtanh.f32 %v2260_v34  ;;  %v1664_v43 = vpop.eup %1663  ;;  %v823_v24 = vadd.f32 1.0, %v1662_v29 }
 0x13c   :  { %1673 = vrcp.f32 %v768_v35  ;;  %v2263_v16 = vadd.f32 %v775_v6, %v774_v53 }
 0x13e   :  { %1675 = vtanh.f32 %v2263_v16 }
 0x13f   :  { %v1666_v39 = vpop.eup %1665  ;;  %1677 = vrcp.f32 %v823_v24 }
 0x140   :  { %v1668_v44 = vpop.eup %1667  ;;  %v830_v57 = vmul.f32 %v1666_v39, %v1664_v43  ;;  %v2451_v43 = vld [vmem:[#allocation6_spill] sm:$0xff]  ;;  %v2452_v39 = vld [vmem:[#allocation5_spill] sm:$0xff] }
 0x141   :  { %v829_v5 = vmul.f32 %v1668_v44, %v827_v18  ;;  %v1670_v61 = vpop.eup %1669 }
 0x143   :  { %v2267_v55 = vadd.f32 %v830_v57, %v829_v5  ;;  %v2453_v5 = vld [vmem:[#allocation7_spill] sm:$0xff] }
 0x145   :  { %v1672_v52 = vpop.eup %1671  ;;  %1679 = vtanh.f32 %v2267_v55 }
 0x146   :  { %v1674_v17 = vpop.eup %1673  ;;  %v723_v56 = vmul.f32 %v1672_v52, %v1670_v61 }
 0x148   :  { %v1676_v60 = vpop.eup %1675  ;;  %v836_v12 = vmul.f32 %v723_v56, %v1898_v25  ;;  %v848_v46 = vmul.f32 %v723_v56, %v1900_v26  ;;  %v860_v51 = vmul.f32 %v723_v56, %v1924_v37  ;;  %v867_v40 = vmul.f32 %v723_v56, %v1902_v27 }
 0x149   :  { %v2274_v62 = vmul.f32 %v1676_v60, %v1674_v17  ;;  %v887_v20 = vmul.f32 %v723_v56, %v1904_v28  ;;  %v900_v14 = vmul.f32 %v723_v56, %v1981_v47  ;;  %v913_v18 = vmul.f32 %v723_v56, %v2451_v43  ;;  %v1678_v52 = vpop.eup %1677 }
 0x14a   :  { %v838_v45 = vrot.slane %v836_v12, 7  ;;  %v850_v8 = vrot.slane %v848_v46, 7  ;;  %v869_v15 = vrot.slane %v867_v40, 7  ;;  %v862_v29 = vrot.slane %v860_v51, 7 }
 0x14b   :  { %v888_v9 = vmul.f32 %v2274_v62, %v1964_v36  ;;  %v901_v35 = vmul.f32 %v2274_v62, %v1966_v38  ;;  %v914_v22 = vmul.f32 %v2274_v62, %v1983_v48  ;;  %v922_v61 = vmul.f32 %v2274_v62, %v2453_v5 }
 0x14c   :  { %v840_v6 = vadd.f32 %v838_v45, %v1864_v3  ;;  %v852_v53 = vadd.f32 %v850_v8, %v1916_v31  ;;  %v871_v24 = vadd.f32 %v869_v15, %v2452_v39  ;;  %v921_v46 = vmul.f32 %v723_v56, %v1910_v30 }
 0x14d   :  { %v890_v44 = vrot.slane %v888_v9, 7  ;;  %v903_v57 = vrot.slane %v901_v35, 7  ;;  %v916_v12 = vrot.slane %v914_v22, 7  ;;  %v924_v51 = vrot.slane %v922_v61, 7 }
 0x14e   :  { %v841_v17 = vadd.f32 %v840_v6, %v1866_v4  ;;  %v853_v60 = vadd.f32 %v852_v53, %v1927_v41  ;;  %v864_v9 = vadd.f32 %v862_v29, %v1878_v11  ;;  %v872_v5 = vadd.f32 %v871_v24, %v1873_v7 }
 0x14f   :  { %v892_v40 = vadd.f32 %v890_v44, %v887_v20  ;;  %v905_v45 = vadd.f32 %v903_v57, %v900_v14  ;;  %v1680_v8 = vpop.eup %1679  ;;  %v918_v22 = vadd.f32 %v916_v12, %v913_v18  ;;  %v926_v53 = vadd.f32 %v924_v51, %v921_v46 }
 0x150   :  { %v1425_v43 = vmul.f32 -1.442695, %v841_v17  ;;  %v1426_v15 = vmul.f32 -1.442695, %v853_v60  ;;  %v833_v35 = vmul.f32 %v1680_v8, %v1678_v52  ;;  %v942_v56 = vmul.f32 %v2274_v62, %v1989_v50 }
 0x151   :  { %v893_v39 = vadd.f32 %v892_v40, %v1918_v32  ;;  %v906_v6 = vadd.f32 %v905_v45, %v1996_v58  ;;  %v927_v24 = vadd.f32 %v926_v53, %v1929_v42  ;;  %v955_v44 = vmul.f32 %v2274_v62, %v2068_v33 }
 0x152   :  { %1681 = vpow2.f32 %v1425_v43  ;;  %835 = vst.msk [vmem:[%s2438_s2] sm:$0x8] %vm834_vm3, %v833_v35  ;;  %v943_v29 = vmul.f32 %v833_v35, %v2070_v21  ;;  %v956_v43 = vmul.f32 %v833_v35, %v2094_v1  ;;  %v865_v18 = vadd.f32 %v864_v9, %v1880_v13 }
 0x153   :  { %1683 = vpow2.f32 %v1426_v15  ;;  %v1428_v20 = vmul.f32 -1.442695, %v893_v39  ;;  %v1429_v14 = vmul.f32 -1.442695, %v906_v6  ;;  %v1427_v61 = vmul.f32 -1.442695, %v872_v5 }
 0x154   :  { %v945_v57 = vrot.slane %v943_v29, 7  ;;  %v958_v52 = vrot.slane %v956_v43, 7  ;;  %v977_v17 = vmul.f32 %v833_v35, %v2109_v49  ;;  %v919_v39 = vadd.f32 %v918_v22, %v1945_v59 }
 0x155   :  { %1685 = vpow2.f32 %v1428_v20  ;;  %v976_v12 = vmul.f32 %v2274_v62, %v2018_v23  ;;  %v1430_v46 = vmul.f32 -1.442695, %v927_v24  ;;  %v969_v45 = vmul.f32 %v833_v35, %v2097_v2 }
 0x156   :  { %1687 = vpow2.f32 %v1429_v14  ;;  %v947_v60 = vadd.f32 %v945_v57, %v942_v56  ;;  %v960_v40 = vadd.f32 %v958_v52, %v955_v44  ;;  %v979_v51 = vrot.slane %v977_v17, 7 }
 0x157   :  { %1689 = vtanh.f32 %v865_v18  ;;  %v968_v53 = vmul.f32 %v2274_v62, %v2038_v0  ;;  %v971_v56 = vrot.slane %v969_v45, 7 }
 0x158   :  { %v948_v8 = vadd.f32 %v947_v60, %v2002_v63  ;;  %1691 = vpow2.f32 %v1427_v61  ;;  %v961_v5 = vadd.f32 %v960_v40, %v2125_v19  ;;  %v981_v9 = vadd.f32 %v979_v51, %v976_v12 }
 0x159   :  { %1693 = vtanh.f32 %v919_v39  ;;  %v973_v18 = vadd.f32 %v971_v56, %v968_v53 }
 0x15a   :  { %v1431_v15 = vmul.f32 -1.442695, %v948_v8  ;;  %1695 = vpow2.f32 %v1430_v46  ;;  %v1432_v22 = vmul.f32 -1.442695, %v961_v5  ;;  %v982_v24 = vadd.f32 %v981_v9, %v2030_v54 }
 0x15b   :  { %v974_v17 = vadd.f32 %v973_v18, %v2045_v10  ;;  %v880_v46 = vrot.slane %v2260_v34, 7 }
 0x15c   :  { %v1682_v6 = vpop.eup %1681  ;;  %1697 = vpow2.f32 %v1431_v15  ;;  %v1433_v52 = vmul.f32 -1.442695, %v982_v24 }
 0x15d   :  { %v1684_v20 = vpop.eup %1683  ;;  %v845_v14 = vadd.f32 1.0, %v1682_v6  ;;  %1699 = vpow2.f32 %v1432_v22  ;;  %v935_v6 = vrot.slane %v2263_v16, 7  ;;  %v990_v16 = vrot.slane %v2267_v55, 7 }
 0x15e   :  { %v857_v35 = vadd.f32 1.0, %v1684_v20 }
 0x15f   :  { %v1686_v29 = vpop.eup %1685  ;;  %1701 = vrcp.f32 %v845_v14 }
 0x160   :  { %v1688_v44 = vpop.eup %1687  ;;  %1703 = vrcp.f32 %v857_v35  ;;  %v897_v43 = vadd.f32 1.0, %v1686_v29 }
 0x161   :  { %v910_v57 = vadd.f32 1.0, %v1688_v44  ;;  %v1690_v61 = vpop.eup %1689 }
 0x162   :  { %1705 = vrcp.f32 %v897_v43  ;;  %v1692_v62 = vpop.eup %1691 }
 0x163   :  { %1707 = vrcp.f32 %v910_v57  ;;  %v1694_v39 = vpop.eup %1693  ;;  %v876_v8 = vadd.f32 1.0, %v1692_v62 }
 0x164   :  { %v1696_v60 = vpop.eup %1695  ;;  %1709 = vpow2.f32 %v1433_v52 }
 0x165   :  { %1711 = vtanh.f32 %v974_v17  ;;  %v931_v56 = vadd.f32 1.0, %v1696_v60 }
 0x166   :  { %v1698_v12 = vpop.eup %1697 }
 0x167   :  { %v1700_v40 = vpop.eup %1699  ;;  %v952_v45 = vadd.f32 1.0, %v1698_v12 }
 0x168   :  { %v965_v5 = vadd.f32 1.0, %v1700_v40 }
 0x169   :  { %v1702_v51 = vpop.eup %1701  ;;  %1713 = vrcp.f32 %v952_v45 }
 0x16a   :  { %v1704_v15 = vpop.eup %1703  ;;  %v883_v9 = vmul.f32 %v1702_v51, %v1690_v61  ;;  %1715 = vrcp.f32 %v965_v5 }
 0x16b   :  { %v882_v22 = vmul.f32 %v1704_v15, %v880_v46  ;;  %1717 = vrcp.f32 %v876_v8 }
 0x16c   :  { %v1706_v53 = vpop.eup %1705 }
 0x16d   :  { %v1708_v20 = vpop.eup %1707  ;;  %v2321_v14 = vadd.f32 %v883_v9, %v882_v22  ;;  %v938_v34 = vmul.f32 %v1706_v53, %v1694_v39 }
 0x16e   :  { %v937_v35 = vmul.f32 %v1708_v20, %v935_v6  ;;  %v1710_v24 = vpop.eup %1709  ;;  %v2454_v20 = vld [vmem:[#allocation6_spill] sm:$0xff] }
 0x16f   :  { %1719 = vtanh.f32 %v2321_v14  ;;  %v1712_v44 = vpop.eup %1711  ;;  %v986_v18 = vadd.f32 1.0, %v1710_v24 }
 0x170   :  { %1721 = vrcp.f32 %v931_v56  ;;  %v2324_v29 = vadd.f32 %v938_v34, %v937_v35  ;;  %v2455_v35 = vld [vmem:[#allocation5_spill] sm:$0xff] }
 0x172   :  { %1723 = vtanh.f32 %v2324_v29 }
 0x173   :  { %v1714_v43 = vpop.eup %1713  ;;  %1725 = vrcp.f32 %v986_v18 }
 0x174   :  { %v1716_v57 = vpop.eup %1715  ;;  %v993_v61 = vmul.f32 %v1714_v43, %v1712_v44  ;;  %v2456_v43 = vld [vmem:[#allocation7_spill] sm:$0xff] }
 0x175   :  { %v992_v52 = vmul.f32 %v1716_v57, %v990_v16  ;;  %v1718_v62 = vpop.eup %1717 }
 0x177   :  { %v2328_v17 = vadd.f32 %v993_v61, %v992_v52 }
 0x179   :  { %v1720_v39 = vpop.eup %1719  ;;  %1727 = vtanh.f32 %v2328_v17 }
 0x17a   :  { %v1722_v60 = vpop.eup %1721  ;;  %v886_v12 = vmul.f32 %v1720_v39, %v1718_v62 }
 0x17c   :  { %v1724_v46 = vpop.eup %1723  ;;  %v999_v40 = vmul.f32 %v886_v12, %v1898_v25  ;;  %v1011_v45 = vmul.f32 %v886_v12, %v1900_v26  ;;  %v1023_v55 = vmul.f32 %v886_v12, %v1924_v37  ;;  %v1030_v51 = vmul.f32 %v886_v12, %v1902_v27 }
 0x17d   :  { %v2335_v8 = vmul.f32 %v1724_v46, %v1722_v60  ;;  %v1050_v6 = vmul.f32 %v886_v12, %v1904_v28  ;;  %v1063_v53 = vmul.f32 %v886_v12, %v1981_v47  ;;  %v1076_v34 = vmul.f32 %v886_v12, %v2454_v20  ;;  %v1726_v57 = vpop.eup %1725 }
 0x17e   :  { %v1001_v5 = vrot.slane %v999_v40, 7  ;;  %v1013_v15 = vrot.slane %v1011_v45, 7  ;;  %v1032_v9 = vrot.slane %v1030_v51, 7  ;;  %v1025_v56 = vrot.slane %v1023_v55, 7 }
 0x17f   :  { %v1051_v22 = vmul.f32 %v2335_v8, %v1964_v36  ;;  %v1064_v25 = vmul.f32 %v2335_v8, %v1966_v38  ;;  %v1077_v26 = vmul.f32 %v2335_v8, %v1983_v48  ;;  %v1085_v18 = vmul.f32 %v2335_v8, %v2456_v43 }
 0x180   :  { %v1003_v27 = vadd.f32 %v1001_v5, %v1864_v3  ;;  %v1015_v37 = vadd.f32 %v1013_v15, %v1916_v31  ;;  %v1034_v24 = vadd.f32 %v1032_v9, %v2455_v35  ;;  %v1084_v3 = vmul.f32 %v886_v12, %v1910_v30 }
 0x181   :  { %v1053_v44 = vrot.slane %v1051_v22, 7  ;;  %v1066_v16 = vrot.slane %v1064_v25, 7  ;;  %v1079_v62 = vrot.slane %v1077_v26, 7  ;;  %v1087_v60 = vrot.slane %v1085_v18, 7 }
 0x182   :  { %v1004_v61 = vadd.f32 %v1003_v27, %v1866_v4  ;;  %v1016_v52 = vadd.f32 %v1015_v37, %v1927_v41  ;;  %v1027_v55 = vadd.f32 %v1025_v56, %v1878_v11  ;;  %v1035_v5 = vadd.f32 %v1034_v24, %v1873_v7 }
 0x183   :  { %v1055_v39 = vadd.f32 %v1053_v44, %v1050_v6  ;;  %v1068_v31 = vadd.f32 %v1066_v16, %v1063_v53  ;;  %v1728_v46 = vpop.eup %1727  ;;  %v1081_v41 = vadd.f32 %v1079_v62, %v1076_v34  ;;  %v1089_v9 = vadd.f32 %v1087_v60, %v1084_v3 }
 0x184   :  { %v1434_v40 = vmul.f32 -1.442695, %v1004_v61  ;;  %v1435_v45 = vmul.f32 -1.442695, %v1016_v52  ;;  %v996_v51 = vmul.f32 %v1728_v46, %v1726_v57  ;;  %v1105_v12 = vmul.f32 %v2335_v8, %v1989_v50 }
 0x185   :  { %v1056_v15 = vadd.f32 %v1055_v39, %v1918_v32  ;;  %v1069_v4 = vadd.f32 %v1068_v31, %v1996_v58  ;;  %v1090_v7 = vadd.f32 %v1089_v9, %v1929_v42  ;;  %v1118_v53 = vmul.f32 %v2335_v8, %v2068_v33 }
 0x186   :  { %1729 = vpow2.f32 %v1434_v40  ;;  %998 = vst.msk [vmem:[%s2438_s2] sm:$0x10] %vm997_vm4, %v996_v51  ;;  %v1106_v22 = vmul.f32 %v996_v51, %v2070_v21  ;;  %v1119_v25 = vmul.f32 %v996_v51, %v2094_v1  ;;  %v1028_v26 = vadd.f32 %v1027_v55, %v1880_v13 }
 0x187   :  { %1731 = vpow2.f32 %v1435_v45  ;;  %v1437_v6 = vmul.f32 -1.442695, %v1056_v15  ;;  %v1438_v11 = vmul.f32 -1.442695, %v1069_v4  ;;  %v1436_v37 = vmul.f32 -1.442695, %v1035_v5 }
 0x188   :  { %v1108_v27 = vrot.slane %v1106_v22, 7  ;;  %v1121_v56 = vrot.slane %v1119_v25, 7  ;;  %v1140_v34 = vmul.f32 %v996_v51, %v2109_v49  ;;  %v1082_v35 = vadd.f32 %v1081_v41, %v1945_v59 }
 0x189   :  { %1733 = vpow2.f32 %v1437_v6  ;;  %v1139_v44 = vmul.f32 %v2335_v8, %v2018_v23  ;;  %v1439_v16 = vmul.f32 -1.442695, %v1090_v7  ;;  %v1132_v57 = vmul.f32 %v996_v51, %v2097_v2 }
 0x18a   :  { %1735 = vpow2.f32 %v1438_v11  ;;  %v1110_v24 = vadd.f32 %v1108_v27, %v1105_v12  ;;  %v1123_v18 = vadd.f32 %v1121_v56, %v1118_v53  ;;  %v1142_v61 = vrot.slane %v1140_v34, 7 }
 0x18b   :  { %1737 = vtanh.f32 %v1028_v26  ;;  %v1131_v60 = vmul.f32 %v2335_v8, %v2038_v0  ;;  %v1134_v46 = vrot.slane %v1132_v57, 7  ;;  %v1043_v25 = vrot.slane %v2321_v14, 7 }
 0x18c   :  { %v1111_v13 = vadd.f32 %v1110_v24, %v2002_v63  ;;  %1739 = vpow2.f32 %v1436_v37  ;;  %v1124_v52 = vadd.f32 %v1123_v18, %v2125_v19  ;;  %v1144_v3 = vadd.f32 %v1142_v61, %v1139_v44 }
 0x18d   :  { %1741 = vtanh.f32 %v1082_v35  ;;  %v1136_v41 = vadd.f32 %v1134_v46, %v1131_v60  ;;  %v1098_v44 = vrot.slane %v2324_v29, 7  ;;  %v1153_v29 = vrot.slane %v2328_v17, 7 }
 0x18e   :  { %v1440_v62 = vmul.f32 -1.442695, %v1111_v13  ;;  %1743 = vpow2.f32 %v1439_v16  ;;  %v1441_v31 = vmul.f32 -1.442695, %v1124_v52  ;;  %v1145_v5 = vadd.f32 %v1144_v3, %v2030_v54 }
 0x18f   :  { %v1137_v11 = vadd.f32 %v1136_v41, %v2045_v10 }
 0x190   :  { %v1730_v39 = vpop.eup %1729  ;;  %1745 = vpow2.f32 %v1440_v62  ;;  %v1442_v6 = vmul.f32 -1.442695, %v1145_v5 }
 0x191   :  { %v1732_v40 = vpop.eup %1731  ;;  %v1008_v45 = vadd.f32 1.0, %v1730_v39  ;;  %1747 = vpow2.f32 %v1441_v31 }
 0x192   :  { %v1020_v55 = vadd.f32 1.0, %v1732_v40 }
 0x193   :  { %v1734_v51 = vpop.eup %1733  ;;  %1749 = vrcp.f32 %v1008_v45 }
 0x194   :  { %v1736_v15 = vpop.eup %1735  ;;  %1751 = vrcp.f32 %v1020_v55  ;;  %v1060_v4 = vadd.f32 1.0, %v1734_v51 }
 0x195   :  { %v1073_v9 = vadd.f32 1.0, %v1736_v15  ;;  %v1738_v12 = vpop.eup %1737 }
 0x196   :  { %1753 = vrcp.f32 %v1060_v4  ;;  %v1740_v8 = vpop.eup %1739 }
 0x197   :  { %1755 = vrcp.f32 %v1073_v9  ;;  %v1742_v22 = vpop.eup %1741  ;;  %v1039_v35 = vadd.f32 1.0, %v1740_v8 }
 0x198   :  { %v1744_v7 = vpop.eup %1743  ;;  %1757 = vpow2.f32 %v1442_v6 }
 0x199   :  { %1759 = vtanh.f32 %v1137_v11  ;;  %v1094_v57 = vadd.f32 1.0, %v1744_v7 }
 0x19a   :  { %v1746_v53 = vpop.eup %1745 }
 0x19b   :  { %v1748_v26 = vpop.eup %1747  ;;  %v1115_v27 = vadd.f32 1.0, %v1746_v53 }
 0x19c   :  { %v1128_v56 = vadd.f32 1.0, %v1748_v26 }
 0x19d   :  { %v1750_v37 = vpop.eup %1749  ;;  %1761 = vrcp.f32 %v1115_v27 }
 0x19e   :  { %v1752_v34 = vpop.eup %1751  ;;  %v1046_v24 = vmul.f32 %v1750_v37, %v1738_v12  ;;  %1763 = vrcp.f32 %v1128_v56 }
 0x19f   :  { %v1045_v16 = vmul.f32 %v1752_v34, %v1043_v25  ;;  %1765 = vrcp.f32 %v1039_v35 }
 0x1a0   :  { %v1754_v18 = vpop.eup %1753 }
 0x1a1   :  { %v1756_v61 = vpop.eup %1755  ;;  %v1047_v13 = vadd.f32 %v1046_v24, %v1045_v16  ;;  %v1101_v52 = vmul.f32 %v1754_v18, %v1742_v22 }
 0x1a2   :  { %v1100_v14 = vmul.f32 %v1756_v61, %v1098_v44  ;;  %v1758_v3 = vpop.eup %1757 }
 0x1a3   :  { %1767 = vtanh.f32 %v1047_v13  ;;  %v1760_v39 = vpop.eup %1759  ;;  %v1149_v60 = vadd.f32 1.0, %v1758_v3 }
 0x1a4   :  { %1769 = vrcp.f32 %v1094_v57  ;;  %v2382_v62 = vadd.f32 %v1101_v52, %v1100_v14 }
 0x1a6   :  { %1771 = vtanh.f32 %v2382_v62 }
 0x1a7   :  { %v1762_v31 = vpop.eup %1761  ;;  %1773 = vrcp.f32 %v1149_v60 }
 0x1a8   :  { %v1764_v46 = vpop.eup %1763  ;;  %v1156_v40 = vmul.f32 %v1762_v31, %v1760_v39 }
 0x1a9   :  { %v1155_v45 = vmul.f32 %v1764_v46, %v1153_v29  ;;  %v1766_v55 = vpop.eup %1765 }
 0x1ab   :  { %v2386_v51 = vadd.f32 %v1156_v40, %v1155_v45 }
 0x1ad   :  { %v1768_v5 = vpop.eup %1767  ;;  %1775 = vtanh.f32 %v2386_v51 }
 0x1ae   :  { %v1770_v15 = vpop.eup %1769  ;;  %v1049_v4 = vmul.f32 %v1768_v5, %v1766_v55 }
 0x1b0   :  { %v1772_v41 = vpop.eup %1771  ;;  %v1162_v12 = vmul.f32 %v1049_v4, %v1904_v28  ;;  %v1175_v6 = vmul.f32 %v1049_v4, %v1981_v47  ;;  %v1196_v56 = vmul.f32 %v1049_v4, %v1910_v30 }
 0x1b1   :  { %v1104_v9 = vmul.f32 %v1772_v41, %v1770_v15  ;;  %v1774_v53 = vpop.eup %1773 }
 0x1b3   :  { %v1163_v17 = vmul.f32 %v1104_v9, %v1964_v36  ;;  %v1176_v8 = vmul.f32 %v1104_v9, %v1966_v38  ;;  %v1197_v7 = vmul.f32 %v1104_v9, %v2456_v43  ;;  %v1189_v37 = vmul.f32 %v1104_v9, %v1983_v48 }
 0x1b4   :  { %v1188_v38 = vmul.f32 %v1049_v4, %v2454_v20  ;;  %v1217_v24 = vmul.f32 %v1104_v9, %v1989_v50  ;;  %v1230_v30 = vmul.f32 %v1104_v9, %v2068_v33  ;;  %v1251_v61 = vmul.f32 %v1104_v9, %v2018_v23 }
 0x1b5   :  { %v1165_v11 = vrot.slane %v1163_v17, 7  ;;  %v1178_v22 = vrot.slane %v1176_v8, 7  ;;  %v1199_v34 = vrot.slane %v1197_v7, 7  ;;  %v1191_v44 = vrot.slane %v1189_v37, 7 }
 0x1b6   :  { %v1243_v55 = vmul.f32 %v1104_v9, %v2038_v0 }
 0x1b7   :  { %v1167_v25 = vadd.f32 %v1165_v11, %v1162_v12  ;;  %v1180_v26 = vadd.f32 %v1178_v22, %v1175_v6  ;;  %v1776_v27 = vpop.eup %1775  ;;  %v1201_v16 = vadd.f32 %v1199_v34, %v1196_v56  ;;  %v1193_v52 = vadd.f32 %v1191_v44, %v1188_v38 }
 0x1b8   :  { %v1159_v28 = vmul.f32 %v1776_v27, %v1774_v53 }
 0x1b9   :  { %v1168_v36 = vadd.f32 %v1167_v25, %v1918_v32  ;;  %v1181_v47 = vadd.f32 %v1180_v26, %v1996_v58  ;;  %v1202_v39 = vadd.f32 %v1201_v16, %v1929_v42  ;;  %v1194_v40 = vadd.f32 %v1193_v52, %v1945_v59 }
 0x1ba   :  { %1161 = vst.msk [vmem:[%s2438_s2] sm:$0x20] %vm1160_vm5, %v1159_v28  ;;  %v1218_v48 = vmul.f32 %v1159_v28, %v2070_v21  ;;  %v1231_v32 = vmul.f32 %v1159_v28, %v2094_v1  ;;  %v1252_v58 = vmul.f32 %v1159_v28, %v2109_v49  ;;  %v1244_v3 = vmul.f32 %v1159_v28, %v2097_v2 }
 0x1bb   :  { %v1443_v43 = vmul.f32 -1.442695, %v1168_v36  ;;  %v1444_v35 = vmul.f32 -1.442695, %v1181_v47  ;;  %v1445_v15 = vmul.f32 -1.442695, %v1202_v39 }
 0x1bc   :  { %v1220_v20 = vrot.slane %v1218_v48, 7  ;;  %v1233_v18 = vrot.slane %v1231_v32, 7  ;;  %v1254_v13 = vrot.slane %v1252_v58, 7  ;;  %v1246_v5 = vrot.slane %v1244_v3, 7 }
 0x1bd   :  { %1777 = vpow2.f32 %v1443_v43  ;;  %v1210_v25 = vrot.slane %v2382_v62, 7  ;;  %v1265_v43 = vrot.slane %v2386_v51, 7 }
 0x1be   :  { %1779 = vpow2.f32 %v1444_v35  ;;  %v1222_v57 = vadd.f32 %v1220_v20, %v1217_v24  ;;  %v1235_v14 = vadd.f32 %v1233_v18, %v1230_v30  ;;  %v1256_v46 = vadd.f32 %v1254_v13, %v1251_v61 }
 0x1bf   :  { %v1248_v17 = vadd.f32 %v1246_v5, %v1243_v55 }
 0x1c0   :  { %v1223_v29 = vadd.f32 %v1222_v57, %v2002_v63  ;;  %v1236_v31 = vadd.f32 %v1235_v14, %v2125_v19  ;;  %v1257_v41 = vadd.f32 %v1256_v46, %v2030_v54 }
 0x1c1   :  { %v1249_v59 = vadd.f32 %v1248_v17, %v2045_v10 }
 0x1c2   :  { %v1446_v60 = vmul.f32 -1.442695, %v1223_v29  ;;  %v1447_v45 = vmul.f32 -1.442695, %v1236_v31  ;;  %v1448_v8 = vmul.f32 -1.442695, %v1257_v41 }
 0x1c4   :  { %1781 = vpow2.f32 %v1446_v60 }
 0x1c5   :  { %1783 = vpow2.f32 %v1447_v45 }
 0x1c6   :  { %1785 = vtanh.f32 %v1194_v40 }
 0x1c7   :  { %v1778_v4 = vpop.eup %1777  ;;  %1787 = vpow2.f32 %v1445_v15 }
 0x1c8   :  { %v1780_v12 = vpop.eup %1779  ;;  %v1172_v42 = vadd.f32 1.0, %v1778_v4 }
 0x1c9   :  { %v1185_v6 = vadd.f32 1.0, %v1780_v12 }
 0x1ca   :  { %1789 = vrcp.f32 %v1172_v42 }
 0x1cb   :  { %1791 = vrcp.f32 %v1185_v6 }
 0x1cc   :  { %1793 = vpow2.f32 %v1448_v8 }
 0x1cd   :  { %1795 = vtanh.f32 %v1249_v59 }
 0x1ce   :  { %v1782_v11 = vpop.eup %1781 }
 0x1cf   :  { %v1784_v9 = vpop.eup %1783  ;;  %v1227_v22 = vadd.f32 1.0, %v1782_v11 }
 0x1d0   :  { %v1240_v7 = vadd.f32 1.0, %v1784_v9  ;;  %v1786_v53 = vpop.eup %1785 }
 0x1d1   :  { %1797 = vrcp.f32 %v1227_v22  ;;  %v1788_v26 = vpop.eup %1787 }
 0x1d2   :  { %1799 = vrcp.f32 %v1240_v7  ;;  %v1206_v36 = vadd.f32 1.0, %v1788_v26 }
 0x1d4   :  { %v1790_v27 = vpop.eup %1789  ;;  %1801 = vrcp.f32 %v1206_v36 }
 0x1d5   :  { %v1792_v37 = vpop.eup %1791  ;;  %v1213_v56 = vmul.f32 %v1790_v27, %v1786_v53 }
 0x1d6   :  { %v1212_v28 = vmul.f32 %v1792_v37, %v1210_v25  ;;  %v1794_v47 = vpop.eup %1793 }
 0x1d7   :  { %v1796_v38 = vpop.eup %1795  ;;  %v1261_v24 = vadd.f32 1.0, %v1794_v47 }
 0x1d8   :  { %v1214_v34 = vadd.f32 %v1213_v56, %v1212_v28 }
 0x1da   :  { %1803 = vtanh.f32 %v1214_v34 }
 0x1db   :  { %v1798_v35 = vpop.eup %1797  ;;  %1805 = vrcp.f32 %v1261_v24 }
 0x1dc   :  { %v1800_v48 = vpop.eup %1799  ;;  %v1268_v44 = vmul.f32 %v1798_v35, %v1796_v38 }
 0x1dd   :  { %v1267_v62 = vmul.f32 %v1800_v48, %v1265_v43 }
 0x1de   :  { %v1802_v32 = vpop.eup %1801 }
 0x1df   :  { %v1269_v30 = vadd.f32 %v1268_v44, %v1267_v62 }
 0x1e1   :  { %1807 = vtanh.f32 %v1269_v30 }
 0x1e4   :  { %v1804_v58 = vpop.eup %1803 }
 0x1e5   :  { %v1806_v16 = vpop.eup %1805  ;;  %v1216_v20 = vmul.f32 %v1804_v58, %v1802_v32 }
 0x1e7   :  { %v1274_v61 = vmul.f32 %v1216_v20, %v1989_v50  ;;  %v1287_v13 = vmul.f32 %v1216_v20, %v2068_v33  ;;  %v1308_v60 = vmul.f32 %v1216_v20, %v2018_v23 }
 0x1eb   :  { %v1808_v18 = vpop.eup %1807 }
 0x1ec   :  { %v1271_v57 = vmul.f32 %v1808_v18, %v1806_v16 }
 0x1ee   :  { %1273 = vst.msk [vmem:[%s2438_s2] sm:$0x40] %vm1272_vm6, %v1271_v57  ;;  %v1275_v51 = vmul.f32 %v1271_v57, %v2070_v21  ;;  %v1288_v52 = vmul.f32 %v1271_v57, %v2094_v1  ;;  %v1309_v14 = vmul.f32 %v1271_v57, %v2109_v49  ;;  %v1301_v50 = vmul.f32 %v1271_v57, %v2097_v2 }
 0x1ef   :  { %v1300_v1 = vmul.f32 %v1216_v20, %v2038_v0  ;;  %v1322_v0 = vrot.slane %v1269_v30, 7 }
 0x1f0   :  { %v1277_v3 = vrot.slane %v1275_v51, 7  ;;  %v1290_v39 = vrot.slane %v1288_v52, 7  ;;  %v1311_v46 = vrot.slane %v1309_v14, 7  ;;  %v1303_v5 = vrot.slane %v1301_v50, 7 }
 0x1f2   :  { %v1279_v29 = vadd.f32 %v1277_v3, %v1274_v61  ;;  %v1292_v31 = vadd.f32 %v1290_v39, %v1287_v13  ;;  %v1313_v33 = vadd.f32 %v1311_v46, %v1308_v60  ;;  %v1305_v15 = vadd.f32 %v1303_v5, %v1300_v1 }
 0x1f4   :  { %v1280_v40 = vadd.f32 %v1279_v29, %v2002_v63  ;;  %v1293_v45 = vadd.f32 %v1292_v31, %v2125_v19  ;;  %v1314_v49 = vadd.f32 %v1313_v33, %v2030_v54  ;;  %v1306_v23 = vadd.f32 %v1305_v15, %v2045_v10 }
 0x1f6   :  { %v1449_v21 = vmul.f32 -1.442695, %v1280_v40  ;;  %v1450_v55 = vmul.f32 -1.442695, %v1293_v45  ;;  %v1451_v4 = vmul.f32 -1.442695, %v1314_v49 }
 0x1f8   :  { %1809 = vpow2.f32 %v1449_v21 }
 0x1f9   :  { %1811 = vpow2.f32 %v1450_v55 }
 0x1fa   :  { %1813 = vpow2.f32 %v1451_v4 }
 0x1fb   :  { %1815 = vtanh.f32 %v1306_v23 }
 0x202   :  { %v1810_v41 = vpop.eup %1809 }
 0x203   :  { %v1812_v2 = vpop.eup %1811  ;;  %v1284_v63 = vadd.f32 1.0, %v1810_v41 }
 0x204   :  { %v1297_v19 = vadd.f32 1.0, %v1812_v2  ;;  %v1814_v12 = vpop.eup %1813 }
 0x205   :  { %1817 = vrcp.f32 %v1284_v63  ;;  %v1816_v42 = vpop.eup %1815  ;;  %v1318_v6 = vadd.f32 1.0, %v1814_v12 }
 0x206   :  { %1819 = vrcp.f32 %v1297_v19 }
 0x207   :  { %1821 = vrcp.f32 %v1318_v6 }
 0x20f   :  { %v1818_v17 = vpop.eup %1817 }
 0x210   :  { %v1820_v8 = vpop.eup %1819  ;;  %v1325_v59 = vmul.f32 %v1818_v17, %v1816_v42 }
 0x211   :  { %v1324_v54 = vmul.f32 %v1820_v8, %v1322_v0  ;;  %v1822_v10 = vpop.eup %1821 }
 0x213   :  { %v1326_v11 = vadd.f32 %v1325_v59, %v1324_v54 }
 0x215   :  { %1823 = vtanh.f32 %v1326_v11 }
 0x21f   :  { %v1824_v9 = vpop.eup %1823 }
 0x220   :  { %v1328_v22 = vmul.f32 %v1824_v9, %v1822_v10 }
 0x222   :  { %1330 = vst.msk [vmem:[%s2438_s2] sm:$0x80] %vm1329_vm7, %v1328_v22 }
 0x223   :  { %1335 = vsyncpa [#allocation3], 1 }

</bundles_post_ra>
